<compile_context>
chip_gen: v7x
topology: tpu7x:2x2x1
jax: 0.10.0
libtpu: 0.0.40
codegen_flags: <defaults>
</compile_context>

<pallas_src>
import jax
import jax.numpy as jnp
from jax.experimental import pallas as pl
from jax.experimental.pallas import tpu as pltpu

EMB = 64      # obs-embedding width per branch
FEAT = 256    # predictor / target feature width


def _rnd_kernel(obs_ref, hs_ref,
                w_emb_ref, b_emb_ref,
                w0e_ref, w0h_ref, b0_ref,
                w256_ref, b256_ref,
                pred_ref, targ_ref):
    """One batch tile of the fused predictor + target RND MLP stack.

    obs_ref : (TB, F) f32        hs_ref : (TB, HSF) f32
    w_emb   : (F, 128)   bf16    fused [pred_emb | targ_emb] embedding weights
    w0e     : (128, 512) bf16    block-diagonal first-layer weights (embedding part)
    w0h     : (HSF, 512) bf16    first-layer weights (hidden-state part), both branches
    w256    : (5, 256, 256) bf16 [p1, p2, p3, t1, t2], pre-transposed to (in, out)
    biases are f32; pred_ref / targ_ref : (TB, 256) f32.
    """

    def mm(a, w):
        # bf16 operands on the MXU, f32 accumulation.
        return jnp.dot(a.astype(jnp.bfloat16), w, preferred_element_type=jnp.float32)

    obs = obs_ref[...]
    hs = hs_ref[...]

    # Fused obs embedding for both branches: (TB, 128) = [pred(64) | targ(64)].
    e = jnp.maximum(mm(obs, w_emb_ref[...]) + b_emb_ref[...], 0.0)

    # Fused first hidden layer of both branches: (TB, 512) = [pred(256) | targ(256)].
    # Linear(concat([e, hs])) is expressed as two matmuls (no in-kernel concat);
    # the block-diagonal w0e keeps the two branches separate, and hs is streamed once.
    y0 = jnp.maximum(mm(e, w0e_ref[...]) + mm(hs, w0h_ref[...]) + b0_ref[...], 0.0)
    yp = y0[:, :FEAT]
    yt = y0[:, FEAT:]

    # Predictor tail: two hidden layers with ReLU, final layer without.
    yp = jnp.maximum(mm(yp, w256_ref[0]) + b256_ref[0], 0.0)
    yp = jnp.maximum(mm(yp, w256_ref[1]) + b256_ref[1], 0.0)
    pred_ref[...] = mm(yp, w256_ref[2]) + b256_ref[2]

    # Target tail: one hidden layer with ReLU, final layer without.
    yt = jnp.maximum(mm(yt, w256_ref[3]) + b256_ref[3], 0.0)
    targ_ref[...] = mm(yt, w256_ref[4]) + b256_ref[4]


def _round_up(x, m):
    return (x + m - 1) // m * m


def prepare_rnd_params(params):
    """One-time weight preprocessing (run once at init, NOT per forward call).

    Transposes every weight to (in, out), splits the first-layer weights at the
    concat boundary, fuses the two branches' shared-LHS weights, stacks the 256x256
    tail weights, and casts all matmul weights to bf16 (biases stay f32).
    """
    f32 = jnp.float32
    bf16 = jnp.bfloat16

    pe_w = jnp.asarray(params["pe_w"], f32)          # (64, F)
    te_w = jnp.asarray(params["te_w"], f32)          # (64, F)
    p0_w = jnp.asarray(params["p0_w"], f32)          # (256, 64+HSF)
    t0_w = jnp.asarray(params["t0_w"], f32)          # (256, 64+HSF)

    # Fused embedding: obs @ [pred_emb.T | targ_emb.T]  -> (F, 128)
    w_emb = jnp.concatenate([pe_w.T, te_w.T], axis=1).astype(bf16)
    b_emb = jnp.concatenate([params["pe_b"], params["te_b"]]).reshape(1, 2 * EMB).astype(f32)

    # First hidden layer, embedding part: block-diagonal (128, 512) so each branch only
    # sees its own embedding half.
    w0e = jnp.zeros((2 * EMB, 2 * FEAT), f32)
    w0e = w0e.at[:EMB, :FEAT].set(p0_w[:, :EMB].T)
    w0e = w0e.at[EMB:, FEAT:].set(t0_w[:, :EMB].T)
    w0e = w0e.astype(bf16)

    # First hidden layer, hidden-state part: (HSF, 512), both branches side by side.
    w0h = jnp.concatenate([p0_w[:, EMB:].T, t0_w[:, EMB:].T], axis=1).astype(bf16)
    b0 = jnp.concatenate([params["p0_b"], params["t0_b"]]).reshape(1, 2 * FEAT).astype(f32)

    # Tail 256x256 layers, stacked: [p1, p2, p3, t1, t2].
    w256 = jnp.stack([params["p1_w"].T, params["p2_w"].T, params["p3_w"].T,
                      params["t1_w"].T, params["t2_w"].T]).astype(bf16)          # (5,256,256)
    b256 = jnp.stack([params["p1_b"], params["p2_b"], params["p3_b"],
                      params["t1_b"], params["t2_b"]]).astype(f32).reshape(5, 1, FEAT)

    return {"w_emb": w_emb, "b_emb": b_emb, "w0e": w0e, "w0h": w0h, "b0": b0,
            "w256": w256, "b256": b256}


@jax.jit
def selfies_embedded_concat_rnd(obs, hidden_state, prep):
    """obs: (B, F) f32, hidden_state: (B, HSF) f32, prep: prepare_rnd_params(...) output.

    Returns (predicted_features, target_features), each (B, 256) f32.
    """
    B, F = obs.shape
    HSF = hidden_state.shape[1]

    # Tile selection: single whole-batch tile for small B (no padding at all);
    # large B uses up to 512-row tiles while keeping >= 2 grid steps for v7x megacore.
    if B <= 128:
        TB = B
    else:
        TB = min(512, _round_up((B + 1) // 2, 8))
    grid = ((B + TB - 1) // TB,)

    def row_spec(cols):
        return pl.BlockSpec((TB, cols), lambda i: (i, 0))

    def const_spec(a):
        nd = a.ndim
        return pl.BlockSpec(a.shape, lambda i: (0,) * nd)

    weights = (prep["w_emb"], prep["b_emb"], prep["w0e"], prep["w0h"],
               prep["b0"], prep["w256"], prep["b256"])

    flops = 2 * B * (F * 2 * EMB + 2 * EMB * 2 * FEAT + HSF * 2 * FEAT
                     + 5 * FEAT * FEAT)
    bytes_accessed = (int(obs.size) * obs.dtype.itemsize
                      + int(hidden_state.size) * hidden_state.dtype.itemsize
                      + 2 * B * FEAT * 4
                      + sum(int(w.size) * w.dtype.itemsize for w in weights))

    pred, targ = pl.pallas_call(
        _rnd_kernel,
        out_shape=(jax.ShapeDtypeStruct((B, FEAT), jnp.float32),
                   jax.ShapeDtypeStruct((B, FEAT), jnp.float32)),
        grid=grid,
        in_specs=[row_spec(F), row_spec(HSF)] + [const_spec(w) for w in weights],
        out_specs=(row_spec(FEAT), row_spec(FEAT)),
        compiler_params=pltpu.CompilerParams(
            dimension_semantics=("parallel",)),
        cost_estimate=pl.CostEstimate(
            flops=flops, transcendentals=0, bytes_accessed=bytes_accessed),
    )(obs, hidden_state, *weights)

    return pred, targ


def _reference(obs, hs, p):
    """Pure-JAX mirror of the PyTorch forward (for verification)."""
    def lin(x, w, b):
        return x @ w.T + b

    e = jax.nn.relu(lin(obs, p["pe_w"], p["pe_b"]))
    cat = jnp.concatenate([e, hs], axis=1)
    y = jax.nn.relu(lin(cat, p["p0_w"], p["p0_b"]))
    y = jax.nn.relu(lin(y, p["p1_w"], p["p1_b"]))
    y = jax.nn.relu(lin(y, p["p2_w"], p["p2_b"]))
    pred = lin(y, p["p3_w"], p["p3_b"])

    e = jax.nn.relu(lin(obs, p["te_w"], p["te_b"]))
    cat = jnp.concatenate([e, hs], axis=1)
    y = jax.nn.relu(lin(cat, p["t0_w"], p["t0_b"]))
    y = jax.nn.relu(lin(y, p["t1_w"], p["t1_b"]))
    targ = lin(y, p["t2_w"], p["t2_b"])
    return pred, targ


def _init_params(key, obs_features, hsf):
    """Deterministic synthetic init (PyTorch Linear-style shapes and ranges)."""
    cat = EMB + hsf
    ks = jax.random.split(key, 20)

    def u(k, shape, fan_in):
        s = 1.0 / jnp.sqrt(float(fan_in))
        return jax.random.uniform(k, shape, jnp.float32, minval=-s, maxval=s)

    return {
        # predictor
        "pe_w": u(ks[0], (EMB, obs_features), obs_features),
        "pe_b": u(ks[1], (EMB,), obs_features),
        "p0_w": u(ks[2], (FEAT, cat), cat),
        "p0_b": u(ks[3], (FEAT,), cat),
        "p1_w": u(ks[4], (FEAT, FEAT), FEAT),
        "p1_b": u(ks[5], (FEAT,), FEAT),
        "p2_w": u(ks[6], (FEAT, FEAT), FEAT),
        "p2_b": u(ks[7], (FEAT,), FEAT),
        "p3_w": u(ks[8], (FEAT, FEAT), FEAT),
        "p3_b": u(ks[9], (FEAT,), FEAT),
        # target (frozen in PyTorch; forward math identical)
        "te_w": u(ks[10], (EMB, obs_features), obs_features),
        "te_b": u(ks[11], (EMB,), obs_features),
        "t0_w": u(ks[12], (FEAT, cat), cat),
        "t0_b": u(ks[13], (FEAT,), cat),
        "t1_w": u(ks[14], (FEAT, FEAT), FEAT),
        "t1_b": u(ks[15], (FEAT,), FEAT),
        "t2_w": u(ks[16], (FEAT, FEAT), FEAT),
        "t2_b": u(ks[17], (FEAT,), FEAT),
    }


if __name__ == "__main__":
    B = 2
    OBS_F = 32
    HS_SHAPE = (2, 128)                     # hidden_state_shape
    HSF = HS_SHAPE[0] * HS_SHAPE[1]         # 256 flattened hidden-state features

    key = jax.random.PRNGKey(0)
    k_p, k_o, k_h = jax.random.split(key, 3)
    params = _init_params(k_p, OBS_F, HSF)
    prep = prepare_rnd_params(params)       # one-time weight preprocessing (outside the hot path)

    obs = jax.random.normal(k_o, (B, OBS_F), jnp.float32)
    hidden_state = 0.1 * jax.random.normal(k_h, (B, HSF), jnp.float32)

    pred, targ = selfies_embedded_concat_rnd(obs, hidden_state, prep)
    pred = jax.block_until_ready(pred)
    targ = jax.block_until_ready(targ)

    assert pred.shape == (B, FEAT) and targ.shape == (B, FEAT)

    ref_pred, ref_targ = _reference(obs, hidden_state, params)
    assert jnp.allclose(pred, ref_pred, atol=2e-2, rtol=2e-2), "predictor mismatch"
    assert jnp.allclose(targ, ref_targ, atol=2e-2, rtol=2e-2), "target mismatch"

    print("KERNEL_OK")
</pallas_src>

<mosaic_0001>
module attributes {stable_mosaic.version = 11 : i64} {
  func.func @_rnd_kernel(%arg0: i32, %arg1: memref<2x32xf32, #tpu.memory_space<vmem>>, %arg2: memref<2x256xf32, #tpu.memory_space<vmem>>, %arg3: memref<32x128xbf16, #tpu.memory_space<vmem>>, %arg4: memref<1x128xf32, #tpu.memory_space<vmem>>, %arg5: memref<128x512xbf16, #tpu.memory_space<vmem>>, %arg6: memref<256x512xbf16, #tpu.memory_space<vmem>>, %arg7: memref<1x512xf32, #tpu.memory_space<vmem>>, %arg8: memref<5x256x256xbf16, #tpu.memory_space<vmem>>, %arg9: memref<5x1x256xf32, #tpu.memory_space<vmem>>, %arg10: memref<2x256xf32, #tpu.memory_space<vmem>>, %arg11: memref<2x256xf32, #tpu.memory_space<vmem>>) attributes {dimension_semantics = [#tpu.dimension_semantics<parallel>], iteration_bounds = array<i64: 1>, scalar_prefetch = 0 : i64, scratch_operands = 0 : i64, tpu.core_type = #tpu.core_type<tc>, window_params = [{transform_indices = @transform_0, window_bounds = array<i64: 2, 32>}, {transform_indices = @transform_1, window_bounds = array<i64: 2, 256>}, {pipeline_mode = #tpu.pipeline_mode<synchronous>, transform_indices = @transform_2, window_bounds = array<i64: 32, 128>}, {pipeline_mode = #tpu.pipeline_mode<synchronous>, transform_indices = @transform_3, window_bounds = array<i64: 1, 128>}, {pipeline_mode = #tpu.pipeline_mode<synchronous>, transform_indices = @transform_4, window_bounds = array<i64: 128, 512>}, {pipeline_mode = #tpu.pipeline_mode<synchronous>, transform_indices = @transform_5, window_bounds = array<i64: 256, 512>}, {pipeline_mode = #tpu.pipeline_mode<synchronous>, transform_indices = @transform_6, window_bounds = array<i64: 1, 512>}, {pipeline_mode = #tpu.pipeline_mode<synchronous>, transform_indices = @transform_7, window_bounds = array<i64: 5, 256, 256>}, {pipeline_mode = #tpu.pipeline_mode<synchronous>, transform_indices = @transform_8, window_bounds = array<i64: 5, 1, 256>}, {transform_indices = @transform_9, window_bounds = array<i64: 2, 256>}, {transform_indices = @transform_10, window_bounds = array<i64: 2, 256>}]} {
    %c0 = arith.constant 0 : index
    %c0_0 = arith.constant 0 : index
    %0 = vector.load %arg1[%c0, %c0_0] : memref<2x32xf32, #tpu.memory_space<vmem>>, vector<2x32xf32>
    %c0_1 = arith.constant 0 : index
    %c0_2 = arith.constant 0 : index
    %1 = vector.load %arg2[%c0_1, %c0_2] : memref<2x256xf32, #tpu.memory_space<vmem>>, vector<2x256xf32>
    %c0_3 = arith.constant 0 : index
    %c0_4 = arith.constant 0 : index
    %2 = vector.load %arg3[%c0_3, %c0_4] : memref<32x128xbf16, #tpu.memory_space<vmem>>, vector<32x128xbf16>
    %3 = arith.truncf %0 : vector<2x32xf32> to vector<2x32xbf16>
    %cst = arith.constant dense<0.000000e+00> : vector<2x128xf32>
    %4 = tpu.matmul %3, %2, %cst {dimension_numbers = #tpu.dot_dimension_numbers<[1], [0], [0], [1], [0, 0, 1, 1], [], []>} : vector<2x32xbf16>, vector<32x128xbf16>, vector<2x128xf32> -> vector<2x128xf32>
    %c0_5 = arith.constant 0 : index
    %c0_6 = arith.constant 0 : index
    %5 = vector.load %arg4[%c0_5, %c0_6] : memref<1x128xf32, #tpu.memory_space<vmem>>, vector<1x128xf32>
    %6 = vector.broadcast %5 : vector<1x128xf32> to vector<2x128xf32>
    %7 = arith.addf %4, %6 : vector<2x128xf32>
    %cst_7 = arith.constant 0.000000e+00 : f32
    %8 = vector.broadcast %cst_7 : f32 to vector<2x128xf32>
    %9 = arith.maximumf %7, %8 : vector<2x128xf32>
    %c0_8 = arith.constant 0 : index
    %c0_9 = arith.constant 0 : index
    %10 = vector.load %arg5[%c0_8, %c0_9] : memref<128x512xbf16, #tpu.memory_space<vmem>>, vector<128x512xbf16>
    %11 = arith.truncf %9 : vector<2x128xf32> to vector<2x128xbf16>
    %cst_10 = arith.constant dense<0.000000e+00> : vector<2x512xf32>
    %12 = tpu.matmul %11, %10, %cst_10 {dimension_numbers = #tpu.dot_dimension_numbers<[1], [0], [0], [1], [0, 0, 1, 1], [], []>} : vector<2x128xbf16>, vector<128x512xbf16>, vector<2x512xf32> -> vector<2x512xf32>
    %c0_11 = arith.constant 0 : index
    %c0_12 = arith.constant 0 : index
    %13 = vector.load %arg6[%c0_11, %c0_12] : memref<256x512xbf16, #tpu.memory_space<vmem>>, vector<256x512xbf16>
    %14 = arith.truncf %1 : vector<2x256xf32> to vector<2x256xbf16>
    %cst_13 = arith.constant dense<0.000000e+00> : vector<2x512xf32>
    %15 = tpu.matmul %14, %13, %cst_13 {dimension_numbers = #tpu.dot_dimension_numbers<[1], [0], [0], [1], [0, 0, 1, 1], [], []>} : vector<2x256xbf16>, vector<256x512xbf16>, vector<2x512xf32> -> vector<2x512xf32>
    %16 = arith.addf %12, %15 : vector<2x512xf32>
    %c0_14 = arith.constant 0 : index
    %c0_15 = arith.constant 0 : index
    %17 = vector.load %arg7[%c0_14, %c0_15] : memref<1x512xf32, #tpu.memory_space<vmem>>, vector<1x512xf32>
    %18 = vector.broadcast %17 : vector<1x512xf32> to vector<2x512xf32>
    %19 = arith.addf %16, %18 : vector<2x512xf32>
    %cst_16 = arith.constant 0.000000e+00 : f32
    %20 = vector.broadcast %cst_16 : f32 to vector<2x512xf32>
    %21 = arith.maximumf %19, %20 : vector<2x512xf32>
    %22 = vector.extract_strided_slice %21 {offsets = [0, 0], sizes = [2, 256], strides = [1, 1]} : vector<2x512xf32> to vector<2x256xf32>
    %23 = vector.extract_strided_slice %21 {offsets = [0, 256], sizes = [2, 256], strides = [1, 1]} : vector<2x512xf32> to vector<2x256xf32>
    %c0_17 = arith.constant 0 : index
    %c0_18 = arith.constant 0 : index
    %c0_19 = arith.constant 0 : index
    %24 = vector.load %arg8[%c0_17, %c0_18, %c0_19] : memref<5x256x256xbf16, #tpu.memory_space<vmem>>, vector<1x256x256xbf16>
    %25 = vector.shape_cast %24 : vector<1x256x256xbf16> to vector<256x256xbf16>
    %26 = arith.truncf %22 : vector<2x256xf32> to vector<2x256xbf16>
    %cst_20 = arith.constant dense<0.000000e+00> : vector<2x256xf32>
    %27 = tpu.matmul %26, %25, %cst_20 {dimension_numbers = #tpu.dot_dimension_numbers<[1], [0], [0], [1], [0, 0, 1, 1], [], []>} : vector<2x256xbf16>, vector<256x256xbf16>, vector<2x256xf32> -> vector<2x256xf32>
    %c0_21 = arith.constant 0 : index
    %c0_22 = arith.constant 0 : index
    %c0_23 = arith.constant 0 : index
    %28 = vector.load %arg9[%c0_21, %c0_22, %c0_23] : memref<5x1x256xf32, #tpu.memory_space<vmem>>, vector<1x1x256xf32>
    %29 = vector.shape_cast %28 : vector<1x1x256xf32> to vector<1x256xf32>
    %30 = vector.broadcast %29 : vector<1x256xf32> to vector<2x256xf32>
    %31 = arith.addf %27, %30 : vector<2x256xf32>
    %cst_24 = arith.constant 0.000000e+00 : f32
    %32 = vector.broadcast %cst_24 : f32 to vector<2x256xf32>
    %33 = arith.maximumf %31, %32 : vector<2x256xf32>
    %c1 = arith.constant 1 : index
    %c0_25 = arith.constant 0 : index
    %c0_26 = arith.constant 0 : index
    %34 = vector.load %arg8[%c1, %c0_25, %c0_26] : memref<5x256x256xbf16, #tpu.memory_space<vmem>>, vector<1x256x256xbf16>
    %35 = vector.shape_cast %34 : vector<1x256x256xbf16> to vector<256x256xbf16>
    %36 = arith.truncf %33 : vector<2x256xf32> to vector<2x256xbf16>
    %cst_27 = arith.constant dense<0.000000e+00> : vector<2x256xf32>
    %37 = tpu.matmul %36, %35, %cst_27 {dimension_numbers = #tpu.dot_dimension_numbers<[1], [0], [0], [1], [0, 0, 1, 1], [], []>} : vector<2x256xbf16>, vector<256x256xbf16>, vector<2x256xf32> -> vector<2x256xf32>
    %c1_28 = arith.constant 1 : index
    %c0_29 = arith.constant 0 : index
    %c0_30 = arith.constant 0 : index
    %38 = vector.load %arg9[%c1_28, %c0_29, %c0_30] : memref<5x1x256xf32, #tpu.memory_space<vmem>>, vector<1x1x256xf32>
    %39 = vector.shape_cast %38 : vector<1x1x256xf32> to vector<1x256xf32>
    %40 = vector.broadcast %39 : vector<1x256xf32> to vector<2x256xf32>
    %41 = arith.addf %37, %40 : vector<2x256xf32>
    %cst_31 = arith.constant 0.000000e+00 : f32
    %42 = vector.broadcast %cst_31 : f32 to vector<2x256xf32>
    %43 = arith.maximumf %41, %42 : vector<2x256xf32>
    %c2 = arith.constant 2 : index
    %c0_32 = arith.constant 0 : index
    %c0_33 = arith.constant 0 : index
    %44 = vector.load %arg8[%c2, %c0_32, %c0_33] : memref<5x256x256xbf16, #tpu.memory_space<vmem>>, vector<1x256x256xbf16>
    %45 = vector.shape_cast %44 : vector<1x256x256xbf16> to vector<256x256xbf16>
    %46 = arith.truncf %43 : vector<2x256xf32> to vector<2x256xbf16>
    %cst_34 = arith.constant dense<0.000000e+00> : vector<2x256xf32>
    %47 = tpu.matmul %46, %45, %cst_34 {dimension_numbers = #tpu.dot_dimension_numbers<[1], [0], [0], [1], [0, 0, 1, 1], [], []>} : vector<2x256xbf16>, vector<256x256xbf16>, vector<2x256xf32> -> vector<2x256xf32>
    %c2_35 = arith.constant 2 : index
    %c0_36 = arith.constant 0 : index
    %c0_37 = arith.constant 0 : index
    %48 = vector.load %arg9[%c2_35, %c0_36, %c0_37] : memref<5x1x256xf32, #tpu.memory_space<vmem>>, vector<1x1x256xf32>
    %49 = vector.shape_cast %48 : vector<1x1x256xf32> to vector<1x256xf32>
    %50 = vector.broadcast %49 : vector<1x256xf32> to vector<2x256xf32>
    %51 = arith.addf %47, %50 : vector<2x256xf32>
    %c0_38 = arith.constant 0 : index
    %c0_39 = arith.constant 0 : index
    %52 = vector.load %arg10[%c0_38, %c0_39] : memref<2x256xf32, #tpu.memory_space<vmem>>, vector<2x256xf32>
    tpu.vector_store %arg10[%c0_38, %c0_39], %51 {strides = array<i32>} : memref<2x256xf32, #tpu.memory_space<vmem>>, vector<2x256xf32>,
    %c3 = arith.constant 3 : index
    %c0_40 = arith.constant 0 : index
    %c0_41 = arith.constant 0 : index
    %53 = vector.load %arg8[%c3, %c0_40, %c0_41] : memref<5x256x256xbf16, #tpu.memory_space<vmem>>, vector<1x256x256xbf16>
    %54 = vector.shape_cast %53 : vector<1x256x256xbf16> to vector<256x256xbf16>
    %55 = arith.truncf %23 : vector<2x256xf32> to vector<2x256xbf16>
    %cst_42 = arith.constant dense<0.000000e+00> : vector<2x256xf32>
    %56 = tpu.matmul %55, %54, %cst_42 {dimension_numbers = #tpu.dot_dimension_numbers<[1], [0], [0], [1], [0, 0, 1, 1], [], []>} : vector<2x256xbf16>, vector<256x256xbf16>, vector<2x256xf32> -> vector<2x256xf32>
    %c3_43 = arith.constant 3 : index
    %c0_44 = arith.constant 0 : index
    %c0_45 = arith.constant 0 : index
    %57 = vector.load %arg9[%c3_43, %c0_44, %c0_45] : memref<5x1x256xf32, #tpu.memory_space<vmem>>, vector<1x1x256xf32>
    %58 = vector.shape_cast %57 : vector<1x1x256xf32> to vector<1x256xf32>
    %59 = vector.broadcast %58 : vector<1x256xf32> to vector<2x256xf32>
    %60 = arith.addf %56, %59 : vector<2x256xf32>
    %cst_46 = arith.constant 0.000000e+00 : f32
    %61 = vector.broadcast %cst_46 : f32 to vector<2x256xf32>
    %62 = arith.maximumf %60, %61 : vector<2x256xf32>
    %c4 = arith.constant 4 : index
    %c0_47 = arith.constant 0 : index
    %c0_48 = arith.constant 0 : index
    %63 = vector.load %arg8[%c4, %c0_47, %c0_48] : memref<5x256x256xbf16, #tpu.memory_space<vmem>>, vector<1x256x256xbf16>
    %64 = vector.shape_cast %63 : vector<1x256x256xbf16> to vector<256x256xbf16>
    %65 = arith.truncf %62 : vector<2x256xf32> to vector<2x256xbf16>
    %cst_49 = arith.constant dense<0.000000e+00> : vector<2x256xf32>
    %66 = tpu.matmul %65, %64, %cst_49 {dimension_numbers = #tpu.dot_dimension_numbers<[1], [0], [0], [1], [0, 0, 1, 1], [], []>} : vector<2x256xbf16>, vector<256x256xbf16>, vector<2x256xf32> -> vector<2x256xf32>
    %c4_50 = arith.constant 4 : index
    %c0_51 = arith.constant 0 : index
    %c0_52 = arith.constant 0 : index
    %67 = vector.load %arg9[%c4_50, %c0_51, %c0_52] : memref<5x1x256xf32, #tpu.memory_space<vmem>>, vector<1x1x256xf32>
    %68 = vector.shape_cast %67 : vector<1x1x256xf32> to vector<1x256xf32>
    %69 = vector.broadcast %68 : vector<1x256xf32> to vector<2x256xf32>
    %70 = arith.addf %66, %69 : vector<2x256xf32>
    %c0_53 = arith.constant 0 : index
    %c0_54 = arith.constant 0 : index
    %71 = vector.load %arg11[%c0_53, %c0_54] : memref<2x256xf32, #tpu.memory_space<vmem>>, vector<2x256xf32>
    tpu.vector_store %arg11[%c0_53, %c0_54], %70 {strides = array<i32>} : memref<2x256xf32, #tpu.memory_space<vmem>>, vector<2x256xf32>,
    return
  }
  func.func @transform_0(%arg0: i32) -> (i32, i32) {
    %c0_i32 = arith.constant 0 : i32
    %c0_i32_0 = arith.constant 0 : i32
    return %arg0, %c0_i32 : i32, i32
  }
  func.func @transform_1(%arg0: i32) -> (i32, i32) {
    %c0_i32 = arith.constant 0 : i32
    %c0_i32_0 = arith.constant 0 : i32
    return %arg0, %c0_i32 : i32, i32
  }
  func.func @transform_2(%arg0: i32) -> (i32, i32) {
    %c0_i32 = arith.constant 0 : i32
    %c0_i32_0 = arith.constant 0 : i32
    %c0_i32_1 = arith.constant 0 : i32
    return %c0_i32, %c0_i32_0 : i32, i32
  }
  func.func @transform_3(%arg0: i32) -> (i32, i32) {
    %c0_i32 = arith.constant 0 : i32
    %c0_i32_0 = arith.constant 0 : i32
    %c0_i32_1 = arith.constant 0 : i32
    return %c0_i32, %c0_i32_0 : i32, i32
  }
  func.func @transform_4(%arg0: i32) -> (i32, i32) {
    %c0_i32 = arith.constant 0 : i32
    %c0_i32_0 = arith.constant 0 : i32
    %c0_i32_1 = arith.constant 0 : i32
    return %c0_i32, %c0_i32_0 : i32, i32
  }
  func.func @transform_5(%arg0: i32) -> (i32, i32) {
    %c0_i32 = arith.constant 0 : i32
    %c0_i32_0 = arith.constant 0 : i32
    %c0_i32_1 = arith.constant 0 : i32
    return %c0_i32, %c0_i32_0 : i32, i32
  }
  func.func @transform_6(%arg0: i32) -> (i32, i32) {
    %c0_i32 = arith.constant 0 : i32
    %c0_i32_0 = arith.constant 0 : i32
    %c0_i32_1 = arith.constant 0 : i32
    return %c0_i32, %c0_i32_0 : i32, i32
  }
  func.func @transform_7(%arg0: i32) -> (i32, i32, i32) {
    %c0_i32 = arith.constant 0 : i32
    %c0_i32_0 = arith.constant 0 : i32
    %c0_i32_1 = arith.constant 0 : i32
    %c0_i32_2 = arith.constant 0 : i32
    return %c0_i32, %c0_i32_0, %c0_i32_1 : i32, i32, i32
  }
  func.func @transform_8(%arg0: i32) -> (i32, i32, i32) {
    %c0_i32 = arith.constant 0 : i32
    %c0_i32_0 = arith.constant 0 : i32
    %c0_i32_1 = arith.constant 0 : i32
    %c0_i32_2 = arith.constant 0 : i32
    return %c0_i32, %c0_i32_0, %c0_i32_1 : i32, i32, i32
  }
  func.func @transform_9(%arg0: i32) -> (i32, i32) {
    %c0_i32 = arith.constant 0 : i32
    %c0_i32_0 = arith.constant 0 : i32
    return %arg0, %c0_i32 : i32, i32
  }
  func.func @transform_10(%arg0: i32) -> (i32, i32) {
    %c0_i32 = arith.constant 0 : i32
    %c0_i32_0 = arith.constant 0 : i32
    return %arg0, %c0_i32 : i32, i32
  }
}

</mosaic_0001>

<bundles_post_ra>
// kernel: selfies_embedded_concat_rnd.1
= control target key start
LH: loop header
LB: loop body
LE: loop exit
PB: predicated region body
PF: predicated region fallthrough
CT: control target
= control target key end

     0   :  { %16 = vsyncpa [#allocation3], 0  ;;  %s3390_s0 = inlined_call_operand.hbm [shape: f32[2,32], index: 0, kind: input, shape index: {}]   ;;  %s3391_s1 = inlined_call_operand.hbm [shape: f32[2,256], index: 1, kind: input, shape index: {}]   ;;  %s3392_s2 = inlined_call_operand.vmem [shape: bf16[32,128], index: 2, kind: input, shape index: {}]   ;;  %s3393_s3 = inlined_call_operand.vmem [shape: f32[1,128], index: 3, kind: input, shape index: {}]   ;;  %s3394_s4 = inlined_call_operand.hbm [shape: bf16[128,512], index: 4, kind: input, shape index: {}]   ;;  %s3395_s5 = inlined_call_operand.hbm [shape: bf16[256,512], index: 5, kind: input, shape index: {}]   ;;  %s3396_s6 = inlined_call_operand.hbm [shape: f32[1,512], index: 6, kind: input, shape index: {}]   ;;  %s3397_s7 = inlined_call_operand.hbm [shape: bf16[5,256,256], index: 7, kind: input, shape index: {}]   ;;  %s3398_s8 = inlined_call_operand.vmem [shape: f32[5,1,256], index: 8, kind: input, shape index: {}]   ;;  %s3399_s9 = inlined_call_operand.hbm [shape: f32[2,256], index: 9, kind: output, shape index: {0}]   ;;  %s3400_s10 = inlined_call_operand.hbm [shape: f32[2,256], index: 10, kind: output, shape index: {1}]  }
   0x1   :  { %17 = vsyncpa [#allocation6], 0 }
   0x2   :  { %18 = vsyncpa [#allocation9], 0 }
   0x3   :  { %19 = vsyncpa [#allocation12], 0 }
   0x4   :  { %20 = vsyncpa [#allocation4], 0 }
   0x5   :  { %21 = vsyncpa [#allocation15], 0  ;;  %s3140_s13 = smov [#allocation5]   ;;  %s2952_s17 = scalar_lea.hbm %s3391_s1, 64 }
   0x6   :  { %s38_s14 = sshll.u32 %s3140_s13, 4  ;;  %p2953_p0 = scmp.ne.s32.totalorder %s3391_s1, %s2952_s17  ;;  %s39_s14 = int_to_ptr.vmem [resolvable:$true] %s38_s14 }
   0x7   :  { %p2956_p1 = scmp.lt.u32.totalorder %s2952_s17, %s3391_s1 }
   0x9   :  { %p2958_p2 = pnand %p2956_p1, %p2953_p0 }
   0xb   :  { %2961 = shalt.err (!%p2958_p2)
}
   0xc   :  { %s2962_s22 = scalar_lea.vmem %s39_s14, 64  ;;  %p2967_p4 = scmp.lt.s32.totalorder %s39_s14, %s39_s14 }
   0xd   :  { %p2963_p3 = scmp.ne.s32.totalorder %s39_s14, %s2962_s22  ;;  %p2968_p5 = scmp.lt.s32.totalorder %s2962_s22, %s2962_s22 }
   0xf   :  { %p2969_p6 = por %p2968_p5, %p2967_p4 }
  0x11   :  { %p2970_p7 = pnand %p2969_p6, %p2963_p3 }
  0x13   :  { %2973 = shalt.err (!%p2970_p7)
}
  0x14   :  { %41 = dma.hbm_to_vmem [thread:$0]  %s3391_s1, 64, %s39_s14, [#allocation6]  }
  0x15   :  { %s3141_s25 = smov [#allocation8]   ;;  %s3142_s27 = smov [#allocation2]  }
  0x16   :  { %s63_s26 = sshll.u32 %s3141_s25, 4  ;;  %s28_s28 = sshll.u32 %s3142_s27, 4  ;;  %s64_s26 = int_to_ptr.vmem [resolvable:$true] %s63_s26  ;;  %s29_s28 = int_to_ptr.vmem [resolvable:$true] %s28_s28 }
  0x17   :  { %s2974_s11 = scalar_lea.hbm %s3395_s5, 8192 }
  0x18   :  { %p2975_p8 = scmp.ne.s32.totalorder %s3395_s5, %s2974_s11  ;;  %p2978_p9 = scmp.lt.u32.totalorder %s2974_s11, %s3395_s5 }
  0x1a   :  { %p2980_p10 = pnand %p2978_p9, %p2975_p8 }
  0x1c   :  { %2983 = shalt.err (!%p2980_p10)
}
  0x1d   :  { %s2984_s1 = scalar_lea.vmem %s64_s26, 8192  ;;  %p2989_p12 = scmp.lt.s32.totalorder %s64_s26, %s64_s26 }
  0x1e   :  { %p2985_p11 = scmp.ne.s32.totalorder %s64_s26, %s2984_s1  ;;  %p2990_p13 = scmp.lt.s32.totalorder %s2984_s1, %s2984_s1 }
  0x20   :  { %p2991_p0 = por %p2990_p13, %p2989_p12 }
  0x22   :  { %p2992_p1 = pnand %p2991_p0, %p2985_p11 }
  0x24   :  { %2995 = shalt.err (!%p2992_p1)
}
  0x25   :  { %s3143_s14 = smov 256   ;;  %s3144_s17 = smov 16  }
  0x26   :  { %69 = dma.hbm_to_vmem [thread:$0]  %s3395_s5, 8192, %s64_s26, [#allocation9], %s3143_s14, %s3143_s14, %s3144_s17  }
  0x27   :  { %s2996_s22 = scalar_lea.hbm %s3390_s0, 32 }
  0x28   :  { %p2997_p2 = scmp.ne.s32.totalorder %s3390_s0, %s2996_s22  ;;  %p3000_p3 = scmp.lt.u32.totalorder %s2996_s22, %s3390_s0 }
  0x2a   :  { %p3002_p4 = pnand %p3000_p3, %p2997_p2 }
  0x2c   :  { %3005 = shalt.err (!%p3002_p4)
}
  0x2d   :  { %s3006_s29 = scalar_lea.vmem %s29_s28, 32  ;;  %p3011_p6 = scmp.lt.s32.totalorder %s29_s28, %s29_s28 }
  0x2e   :  { %p3007_p5 = scmp.ne.s32.totalorder %s29_s28, %s3006_s29  ;;  %p3012_p7 = scmp.lt.s32.totalorder %s3006_s29, %s3006_s29 }
  0x30   :  { %p3013_p8 = por %p3012_p7, %p3011_p6 }
  0x32   :  { %p3014_p9 = pnand %p3013_p8, %p3007_p5 }
  0x34   :  { %3017 = shalt.err (!%p3014_p9)
}
  0x35   :  { %31 = dma.hbm_to_vmem [thread:$0]  %s3390_s0, 32, %s29_s28, [#allocation3]  }
  0x36   :  { %s3145_s30 = smov [#allocation7]   ;;  %s3146_s12 = smov [#allocation10]  }
  0x37   :  { %s51_s11 = sshll.u32 %s3145_s30, 4  ;;  %s76_s13 = sshll.u32 %s3146_s12, 4  ;;  %s52_s11 = int_to_ptr.vmem [resolvable:$true] %s51_s11  ;;  %s77_s13 = int_to_ptr.vmem [resolvable:$true] %s76_s13 }
  0x38   :  { %s3018_s1 = scalar_lea.hbm %s3394_s4, 4096 }
  0x39   :  { %p3019_p10 = scmp.ne.s32.totalorder %s3394_s4, %s3018_s1  ;;  %p3022_p11 = scmp.lt.u32.totalorder %s3018_s1, %s3394_s4 }
  0x3b   :  { %p3024_p12 = pnand %p3022_p11, %p3019_p10 }
  0x3d   :  { %3027 = shalt.err (!%p3024_p12)
}
  0x3e   :  { %s3028_s0 = scalar_lea.vmem %s52_s11, 4096  ;;  %p3033_p0 = scmp.lt.s32.totalorder %s52_s11, %s52_s11 }
  0x3f   :  { %p3029_p13 = scmp.ne.s32.totalorder %s52_s11, %s3028_s0  ;;  %p3034_p1 = scmp.lt.s32.totalorder %s3028_s0, %s3028_s0 }
  0x41   :  { %p3035_p2 = por %p3034_p1, %p3033_p0 }
  0x43   :  { %p3036_p3 = pnand %p3035_p2, %p3029_p13 }
  0x45   :  { %3039 = shalt.err (!%p3036_p3)
}
  0x46   :  { %57 = dma.hbm_to_vmem [thread:$0]  %s3394_s4, 4096, %s52_s11, [#allocation6], %s3143_s14, %s3143_s14, %s3144_s17  }
  0x47   :  { %s3040_s25 = scalar_lea.hbm %s3396_s6, 64 }
  0x48   :  { %p3041_p4 = scmp.ne.s32.totalorder %s3396_s6, %s3040_s25  ;;  %p3044_p5 = scmp.lt.u32.totalorder %s3040_s25, %s3396_s6 }
  0x4a   :  { %p3046_p6 = pnand %p3044_p5, %p3041_p4 }
  0x4c   :  { %3049 = shalt.err (!%p3046_p6)
}
  0x4d   :  { %s3050_s30 = scalar_lea.vmem %s77_s13, 64  ;;  %p3055_p8 = scmp.lt.s32.totalorder %s77_s13, %s77_s13 }
  0x4e   :  { %p3051_p7 = scmp.ne.s32.totalorder %s77_s13, %s3050_s30  ;;  %p3056_p9 = scmp.lt.s32.totalorder %s3050_s30, %s3050_s30 }
  0x50   :  { %p3057_p10 = por %p3056_p9, %p3055_p8 }
  0x52   :  { %p3058_p11 = pnand %p3057_p10, %p3051_p7 }
  0x54   :  { %3061 = shalt.err (!%p3058_p11)
}
  0x55   :  { %79 = dma.hbm_to_vmem [thread:$0]  %s3396_s6, 64, %s77_s13, [#allocation9]  }
  0x56   :  { %s3147_s17 = smov [#allocation11]   ;;  %s3062_s16 = scalar_lea.hbm %s3397_s7, 20480 }
  0x57   :  { %s85_s11 = sshll.u32 %s3147_s17, 4  ;;  %p3063_p12 = scmp.ne.s32.totalorder %s3397_s7, %s3062_s16  ;;  %s86_s11 = int_to_ptr.vmem [resolvable:$true] %s85_s11 }
  0x58   :  { %p3066_p13 = scmp.lt.u32.totalorder %s3062_s16, %s3397_s7 }
  0x5a   :  { %p3068_p0 = pnand %p3066_p13, %p3063_p12 }
  0x5c   :  { %3071 = shalt.err (!%p3068_p0)
}
  0x5d   :  { %s3072_s21 = scalar_lea.vmem %s86_s11, 20480  ;;  %p3077_p2 = scmp.lt.s32.totalorder %s86_s11, %s86_s11 }
  0x5e   :  { %p3073_p1 = scmp.ne.s32.totalorder %s86_s11, %s3072_s21  ;;  %p3078_p3 = scmp.lt.s32.totalorder %s3072_s21, %s3072_s21 }
  0x60   :  { %p3079_p4 = por %p3078_p3, %p3077_p2 }
  0x62   :  { %p3080_p5 = pnand %p3079_p4, %p3073_p1 }
  0x64   :  { %3083 = shalt.err (!%p3080_p5)
}
  0x65   :  { %s3148_s6 = smov 128   ;;  %s3149_s13 = smov 8  }
  0x66   :  { %91 = dma.hbm_to_vmem [thread:$0]  %s3397_s7, 20480, %s86_s11, [#allocation12], %s3148_s6, %s3148_s6, %s3149_s13  }
  0x67   :  { %3128 = dma.done.wait [#allocation3], 32  }
  0x68   :  { %3129 = vsyncadd [#allocation3], 4294967264 }
  0x69   :  { %3130 = dma.done.wait [#allocation6], 4160  }
  0x6a   :  { %3131 = vsyncadd [#allocation6], 4294963136 }
  0x6b   :  { %3132 = dma.done.wait [#allocation9], 8256  }
  0x6c   :  { %3133 = vsyncadd [#allocation9], 4294959040 }
  0x6d   :  { %3134 = dma.done.wait [#allocation12], 20480  }
  0x6e   :  { %3135 = vsyncadd [#allocation12], 4294946816  ;;  %v3150_v0 = vmov 0.0   ;;  %vm3151_vm0 = vmmov 0   ;;  %v2566_v1 = vld [vmem:[%s3392_s2] sm:$0xff]   ;;  %v2567_v2 = vld [vmem:[%s3392_s2 + $0x8] sm:$0xff]  }
  0x6f   :  { %2543 = vmatprep.subr.bf16.mxu0 %v3150_v0  ;;  %2547 = vmatprep.mubr.msk.bf16.mxu0 %vm3151_vm0, %v3150_v0  ;;  %v113_v3 = vld [vmem:[#allocation2] sm:$0x3]  ;;  %v2570_v4 = vld [vmem:[#allocation8 + $0xc] ss:$16 sps:$4 sm:$0xff]   ;;  %vm139_vm1 = vcmask 261120   ;;  %s3153_s17 = smov [#allocation13]  }
  0x70   :  { %2544 = vmatpush3.bf16.msra.mxu0 %v2566_v1  ;;  %v119_v5 = vpack.c.bf16 %v113_v3, %v113_v3  ;;  %v2568_v6 = vld [vmem:[#allocation8 + $0x8] ss:$16 sps:$4 sm:$0xff]   ;;  %v2573_v7 = vld [vmem:[#allocation8 + $0x2c] ss:$16 sps:$4 sm:$0xff]   ;;  %v2592_v11 = vld [vmem:[#allocation8 + $0x4] ss:$16 sps:$4 sm:$0xff]  }
  0x71   :  { %2545 = vmatprep.subr.bf16.mxu0 %v3150_v0  ;;  %v2571_v8 = vld [vmem:[#allocation8 + $0x28] ss:$16 sps:$4 sm:$0xff]   ;;  %v2576_v9 = vld [vmem:[#allocation8 + $0x4c] ss:$16 sps:$4 sm:$0xff]   ;;  %v2594_v12 = vld [vmem:[#allocation8] ss:$16 sps:$4 sm:$0xff]   ;;  %614 = vmatprep.subr.bf16.mxu1 %v2592_v11 }
  0x72   :  { %v2574_v10 = vld [vmem:[#allocation8 + $0x48] ss:$16 sps:$4 sm:$0xff]   ;;  %v2579_v13 = vld [vmem:[#allocation8 + $0x6c] ss:$16 sps:$4 sm:$0xff]   ;;  %615 = vmatpush1.bf16.msra.mxu1 %v2594_v12  ;;  %v2598_v14 = vld [vmem:[#allocation8 + $0x24] ss:$16 sps:$4 sm:$0xff]  }
  0x73   :  { %v2600_v15 = vld [vmem:[#allocation8 + $0x20] ss:$16 sps:$4 sm:$0xff]   ;;  %v2577_v16 = vld [vmem:[#allocation8 + $0x68] ss:$16 sps:$4 sm:$0xff]   ;;  %616 = vmatprep.subr.bf16.mxu1 %v2598_v14  ;;  %v2582_v17 = vld [vmem:[#allocation8 + $0x8c] ss:$16 sps:$4 sm:$0xff]  }
  0x74   :  { %2546 = vmatpush3.bf16.msra.mxu0 %v2567_v2  ;;  %v2604_v18 = vld [vmem:[#allocation8 + $0x44] ss:$16 sps:$4 sm:$0xff]   ;;  %v2606_v19 = vld [vmem:[#allocation8 + $0x40] ss:$16 sps:$4 sm:$0xff]   ;;  %v2580_v21 = vld [vmem:[#allocation8 + $0x88] ss:$16 sps:$4 sm:$0xff]  }
  0x75   :  { %655 = vmatprep.subr.bf16.mxu0 %v2570_v4  ;;  %v2610_v20 = vld [vmem:[#allocation8 + $0x64] ss:$16 sps:$4 sm:$0xff]   ;;  %v2585_v22 = vld [vmem:[#allocation8 + $0xac] ss:$16 sps:$4 sm:$0xff]   ;;  %v2612_v23 = vld [vmem:[#allocation8 + $0x60] ss:$16 sps:$4 sm:$0xff]  }
  0x76   :  { %617 = vmatpush1.bf16.msra.mxu1 %v2600_v15  ;;  %v2616_v24 = vld [vmem:[#allocation8 + $0x84] ss:$16 sps:$4 sm:$0xff]   ;;  %v2583_v25 = vld [vmem:[#allocation8 + $0xa8] ss:$16 sps:$4 sm:$0xff]   ;;  %v2588_v26 = vld [vmem:[#allocation8 + $0xcc] ss:$16 sps:$4 sm:$0xff]  }
  0x77   :  { %2548 = vmatmul.mubr.msk.bf16.vlgmr.msra.gmra.mrb[0].mxu0 %vm139_vm1, %v119_v5  ;;  %618 = vmatprep.subr.bf16.mxu1 %v2604_v18  ;;  %v2618_v27 = vld [vmem:[#allocation8 + $0x80] ss:$16 sps:$4 sm:$0xff]   ;;  %v2622_v28 = vld [vmem:[#allocation8 + $0xa4] ss:$16 sps:$4 sm:$0xff]   ;;  %v2586_v29 = vld [vmem:[#allocation8 + $0xc8] ss:$16 sps:$4 sm:$0xff]  }
  0x78   :  { %656 = vmatpush1.bf16.msra.mxu0 %v2568_v6  ;;  %v2591_v30 = vld [vmem:[#allocation8 + $0xec] ss:$16 sps:$4 sm:$0xff]   ;;  %v2624_v31 = vld [vmem:[#allocation8 + $0xa0] ss:$16 sps:$4 sm:$0xff]   ;;  %v2628_v32 = vld [vmem:[#allocation8 + $0xc4] ss:$16 sps:$4 sm:$0xff]  }
  0x79   :  { %657 = vmatprep.subr.bf16.mxu0 %v2573_v7  ;;  %v2589_v33 = vld [vmem:[#allocation8 + $0xe8] ss:$16 sps:$4 sm:$0xff]   ;;  %v2597_v34 = vld [vmem:[#allocation8 + $0x10c] ss:$16 sps:$4 sm:$0xff]   ;;  %v2630_v36 = vld [vmem:[#allocation8 + $0xc0] ss:$16 sps:$4 sm:$0xff]  }
  0x7a   :  { %619 = vmatpush1.bf16.msra.mxu1 %v2606_v19  ;;  %v3294_v35 = vld.sshfl [vmem:[#allocation5] sm:$0x33 pattern:$0x76325410]  ;;  %v2634_v38 = vld [vmem:[#allocation8 + $0xe4] ss:$16 sps:$4 sm:$0xff]  }
  0x7b   :  { %620 = vmatprep.subr.bf16.mxu1 %v2610_v20  ;;  %v289_v37 = vcombine.high %v3294_v35, %v3294_v35  ;;  %v2595_v39 = vld [vmem:[#allocation8 + $0x108] ss:$16 sps:$4 sm:$0xff]   ;;  %v2603_v41 = vld [vmem:[#allocation8 + $0x12c] ss:$16 sps:$4 sm:$0xff]   ;;  %v2636_v42 = vld [vmem:[#allocation8 + $0xe0] ss:$16 sps:$4 sm:$0xff]  }
  0x7c   :  { %658 = vmatpush1.bf16.msra.mxu0 %v2571_v8  ;;  %v2640_v43 = vld [vmem:[#allocation8 + $0x104] ss:$16 sps:$4 sm:$0xff]   ;;  %v2601_v44 = vld [vmem:[#allocation8 + $0x128] ss:$16 sps:$4 sm:$0xff]   ;;  %v2609_v45 = vld [vmem:[#allocation8 + $0x14c] ss:$16 sps:$4 sm:$0xff]   ;;  %v292_v8 = vpack.c.bf16 %v3294_v35, %v3294_v35 }
  0x7d   :  { %659 = vmatprep.subr.bf16.mxu0 %v2576_v9  ;;  %v293_v40 = vpack.c.bf16 %v289_v37, %v289_v37  ;;  %v2642_v46 = vld [vmem:[#allocation8 + $0x100] ss:$16 sps:$4 sm:$0xff]   ;;  %v2646_v47 = vld [vmem:[#allocation8 + $0x124] ss:$16 sps:$4 sm:$0xff]   ;;  %v2607_v48 = vld [vmem:[#allocation8 + $0x148] ss:$16 sps:$4 sm:$0xff]  }
  0x7e   :  { %621 = vmatpush1.bf16.msra.mxu1 %v2612_v23  ;;  %v2615_v49 = vld [vmem:[#allocation8 + $0x16c] ss:$16 sps:$4 sm:$0xff]   ;;  %v2648_v50 = vld [vmem:[#allocation8 + $0x120] ss:$16 sps:$4 sm:$0xff]   ;;  %v2652_v51 = vld [vmem:[#allocation8 + $0x144] ss:$16 sps:$4 sm:$0xff]  }
  0x7f   :  { %622 = vmatprep.subr.bf16.mxu1 %v2616_v24  ;;  %687 = vmatprep.mubr.bf16.mxu0 %v293_v40  ;;  %v2613_v52 = vld [vmem:[#allocation8 + $0x168] ss:$16 sps:$4 sm:$0xff]   ;;  %v2621_v53 = vld [vmem:[#allocation8 + $0x18c] ss:$16 sps:$4 sm:$0xff]   ;;  %v2654_v54 = vld [vmem:[#allocation8 + $0x140] ss:$16 sps:$4 sm:$0xff]  }
  0x80   :  { %660 = vmatpush1.bf16.msra.mxu0 %v2574_v10  ;;  %646 = vmatprep.mubr.bf16.mxu1 %v293_v40  ;;  %v2619_v55 = vld [vmem:[#allocation8 + $0x188] ss:$16 sps:$4 sm:$0xff]   ;;  %v2627_v56 = vld [vmem:[#allocation8 + $0x1ac] ss:$16 sps:$4 sm:$0xff]   ;;  %v2658_v57 = vld [vmem:[#allocation8 + $0x164] ss:$16 sps:$4 sm:$0xff]  }
  0x81   :  { %661 = vmatprep.subr.bf16.mxu0 %v2579_v13  ;;  %v2660_v58 = vld [vmem:[#allocation8 + $0x160] ss:$16 sps:$4 sm:$0xff]   ;;  %v2664_v59 = vld [vmem:[#allocation8 + $0x184] ss:$16 sps:$4 sm:$0xff]   ;;  %v2625_v60 = vld [vmem:[#allocation8 + $0x1a8] ss:$16 sps:$4 sm:$0xff]  }
  0x82   :  { %623 = vmatpush1.bf16.msra.mxu1 %v2618_v27  ;;  %v2633_v61 = vld [vmem:[#allocation8 + $0x1cc] ss:$16 sps:$4 sm:$0xff]   ;;  %v2666_v62 = vld [vmem:[#allocation8 + $0x180] ss:$16 sps:$4 sm:$0xff]   ;;  %v2670_v63 = vld [vmem:[#allocation8 + $0x1a4] ss:$16 sps:$4 sm:$0xff]  }
  0x83   :  { %624 = vmatprep.subr.bf16.mxu1 %v2622_v28  ;;  %v2631_v0 = vld [vmem:[#allocation8 + $0x1c8] ss:$16 sps:$4 sm:$0xff]   ;;  %v2639_v1 = vld [vmem:[#allocation8 + $0x1ec] ss:$16 sps:$4 sm:$0xff]   ;;  %v2672_v2 = vld [vmem:[#allocation8 + $0x1a0] ss:$16 sps:$4 sm:$0xff]  }
  0x84   :  { %662 = vmatpush1.bf16.msra.mxu0 %v2577_v16  ;;  %v2676_v3 = vld [vmem:[#allocation8 + $0x1c4] ss:$16 sps:$4 sm:$0xff]   ;;  %v2637_v4 = vld [vmem:[#allocation8 + $0x1e8] ss:$16 sps:$4 sm:$0xff]   ;;  %v2678_v6 = vld [vmem:[#allocation8 + $0x1c0] ss:$16 sps:$4 sm:$0xff]  }
  0x85   :  { %663 = vmatprep.subr.bf16.mxu0 %v2582_v17  ;;  %v2645_v5 = vld [vmem:[#allocation7 + $0x4] ss:$16 sps:$4 sm:$0xff]   ;;  %v2643_v7 = vld [vmem:[#allocation7] ss:$16 sps:$4 sm:$0xff]   ;;  %s2247_s11 = sshll.u32 %s3153_s17, 4  ;;  %s2248_s11 = int_to_ptr.vmem [resolvable:$true] %s2247_s11 }
  0x86   :  { %625 = vmatpush1.bf16.msra.mxu1 %v2624_v31  ;;  %v2651_v9 = vld [vmem:[#allocation7 + $0x24] ss:$16 sps:$4 sm:$0xff]   ;;  %v2649_v10 = vld [vmem:[#allocation7 + $0x20] ss:$16 sps:$4 sm:$0xff]   ;;  %s3084_s12 = scalar_lea.vmem %s2248_s11, 64  ;;  %p3089_p7 = scmp.lt.s32.totalorder %s2248_s11, %s2248_s11 }
  0x87   :  { %626 = vmatprep.subr.bf16.mxu1 %v2628_v32  ;;  %v2657_v11 = vld [vmem:[#allocation7 + $0x44] ss:$16 sps:$4 sm:$0xff]   ;;  %v2655_v12 = vld [vmem:[#allocation7 + $0x40] ss:$16 sps:$4 sm:$0xff]   ;;  %p3085_p6 = scmp.ne.s32.totalorder %s2248_s11, %s3084_s12  ;;  %p3090_p8 = scmp.lt.s32.totalorder %s3084_s12, %s3084_s12 }
  0x88   :  { %664 = vmatpush1.bf16.msra.mxu0 %v2580_v21  ;;  %v2663_v13 = vld [vmem:[#allocation7 + $0x64] ss:$16 sps:$4 sm:$0xff]   ;;  %v2661_v14 = vld [vmem:[#allocation7 + $0x60] ss:$16 sps:$4 sm:$0xff]  }
  0x89   :  { %665 = vmatprep.subr.bf16.mxu0 %v2585_v22  ;;  %v2669_v15 = vld [vmem:[#allocation7 + $0x84] ss:$16 sps:$4 sm:$0xff]   ;;  %v2667_v16 = vld [vmem:[#allocation7 + $0x80] ss:$16 sps:$4 sm:$0xff]   ;;  %p3091_p9 = por %p3090_p8, %p3089_p7 }
  0x8a   :  { %627 = vmatpush1.bf16.msra.mxu1 %v2630_v36  ;;  %v2675_v17 = vld [vmem:[#allocation7 + $0xa4] ss:$16 sps:$4 sm:$0xff]   ;;  %v2673_v18 = vld [vmem:[#allocation7 + $0xa0] ss:$16 sps:$4 sm:$0xff]  }
  0x8b   :  { %628 = vmatprep.subr.bf16.mxu1 %v2634_v38  ;;  %v2681_v19 = vld [vmem:[#allocation7 + $0xc4] ss:$16 sps:$4 sm:$0xff]   ;;  %v2684_v21 = vld [vmem:[#allocation8 + $0x1e0] ss:$16 sps:$4 sm:$0xff]   ;;  %p3092_p10 = pnand %p3091_p9, %p3085_p6 }
  0x8c   :  { %666 = vmatpush1.bf16.msra.mxu0 %v2583_v25  ;;  %v2682_v20 = vld [vmem:[#allocation8 + $0x1e4] ss:$16 sps:$4 sm:$0xff]   ;;  %v2679_v22 = vld [vmem:[#allocation7 + $0xc0] ss:$16 sps:$4 sm:$0xff]   ;;  %v2690_v25 = vld [vmem:[#allocation7 + $0xc] ss:$16 sps:$4 sm:$0xff]  }
  0x8d   :  { %667 = vmatprep.subr.bf16.mxu0 %v2588_v26  ;;  %v2687_v23 = vld [vmem:[#allocation7 + $0xe4] ss:$16 sps:$4 sm:$0xff]   ;;  %v2685_v24 = vld [vmem:[#allocation7 + $0xe0] ss:$16 sps:$4 sm:$0xff]   ;;  %v3152_v26 = vmov 0  }
  0x8e   :  { %629 = vmatpush1.bf16.msra.mxu1 %v2636_v42  ;;  %v2712_v27 = vld [vmem:[#allocation11] ss:$8 sps:$4 sm:$0xff]   ;;  %v2714_v28 = vld [vmem:[#allocation11 + $0x4] ss:$8 sps:$4 sm:$0xff]   ;;  %v2727_v37 = vld [vmem:[#allocation11 + $0x50] ss:$8 sps:$4 sm:$0xff]  }
  0x8f   :  { %630 = vmatprep.subr.bf16.mxu1 %v2640_v43  ;;  %v2720_v31 = vld [vmem:[#allocation11 + $0x24] ss:$8 sps:$4 sm:$0xff]   ;;  %v2718_v32 = vld [vmem:[#allocation11 + $0x20] ss:$8 sps:$4 sm:$0xff]   ;;  %v2729_v38 = vld [vmem:[#allocation11 + $0x54] ss:$8 sps:$4 sm:$0xff]  }
  0x90   :  { %668 = vmatpush1.bf16.msra.mxu0 %v2586_v29  ;;  %v2717_v29 = vld [vmem:[#allocation11 + $0x14] ss:$8 sps:$4 sm:$0xff]   ;;  %v2726_v35 = vld [vmem:[#allocation11 + $0x44] ss:$8 sps:$4 sm:$0xff]   ;;  %v2724_v36 = vld [vmem:[#allocation11 + $0x40] ss:$8 sps:$4 sm:$0xff]  }
  0x91   :  { %669 = vmatprep.subr.bf16.mxu0 %v2591_v30  ;;  %v2715_v30 = vld [vmem:[#allocation11 + $0x10] ss:$8 sps:$4 sm:$0xff]   ;;  %v2730_v40 = vld [vmem:[#allocation11 + $0x60] ss:$8 sps:$4 sm:$0xff]   ;;  %v2738_v43 = vld [vmem:[#allocation11 + $0x84] ss:$8 sps:$4 sm:$0xff]  }
  0x92   :  { %631 = vmatpush1.bf16.msra.mxu1 %v2642_v46  ;;  %v2733_v42 = vld [vmem:[#allocation11 + $0x70] ss:$8 sps:$4 sm:$0xff]  }
  0x93   :  { %632 = vmatprep.subr.bf16.mxu1 %v2646_v47  ;;  %v2739_v46 = vld [vmem:[#allocation11 + $0x90] ss:$8 sps:$4 sm:$0xff]   ;;  %v2744_v47 = vld [vmem:[#allocation11 + $0xa4] ss:$8 sps:$4 sm:$0xff]  }
  0x94   :  { %670 = vmatpush1.bf16.msra.mxu0 %v2589_v33  ;;  %v2723_v33 = vld [vmem:[#allocation11 + $0x34] ss:$8 sps:$4 sm:$0xff]  }
  0x95   :  { %671 = vmatprep.subr.bf16.mxu0 %v2597_v34  ;;  %v2721_v34 = vld [vmem:[#allocation11 + $0x30] ss:$8 sps:$4 sm:$0xff]  }
  0x96   :  { %633 = vmatpush1.bf16.msra.mxu1 %v2648_v50  ;;  %v2745_v50 = vld [vmem:[#allocation11 + $0xb0] ss:$8 sps:$4 sm:$0xff]  }
  0x97   :  { %634 = vmatprep.subr.bf16.mxu1 %v2652_v51  ;;  %v2750_v51 = vld [vmem:[#allocation11 + $0xc4] ss:$8 sps:$4 sm:$0xff]  }
  0x98   :  { %672 = vmatpush1.bf16.msra.mxu0 %v2595_v39  ;;  %v2732_v39 = vld [vmem:[#allocation11 + $0x64] ss:$8 sps:$4 sm:$0xff]  }
  0x99   :  { %673 = vmatprep.subr.bf16.mxu0 %v2603_v41  ;;  %v2735_v41 = vld [vmem:[#allocation11 + $0x74] ss:$8 sps:$4 sm:$0xff]  }
  0x9a   :  { %635 = vmatpush1.bf16.msra.mxu1 %v2654_v54  ;;  %v2751_v54 = vld [vmem:[#allocation11 + $0xd0] ss:$8 sps:$4 sm:$0xff]  }
  0x9b   :  { %636 = vmatprep.subr.bf16.mxu1 %v2658_v57 }
  0x9c   :  { %674 = vmatpush1.bf16.msra.mxu0 %v2601_v44  ;;  %v2736_v44 = vld [vmem:[#allocation11 + $0x80] ss:$8 sps:$4 sm:$0xff]  }
  0x9d   :  { %675 = vmatprep.subr.bf16.mxu0 %v2609_v45  ;;  %v2741_v45 = vld [vmem:[#allocation11 + $0x94] ss:$8 sps:$4 sm:$0xff]  }
  0x9e   :  { %637 = vmatpush1.bf16.msra.mxu1 %v2660_v58 }
  0x9f   :  { %638 = vmatprep.subr.bf16.mxu1 %v2664_v59 }
  0xa0   :  { %676 = vmatpush1.bf16.msra.mxu0 %v2607_v48  ;;  %v2742_v48 = vld [vmem:[#allocation11 + $0xa0] ss:$8 sps:$4 sm:$0xff]  }
  0xa1   :  { %677 = vmatprep.subr.bf16.mxu0 %v2615_v49  ;;  %v2747_v49 = vld [vmem:[#allocation11 + $0xb4] ss:$8 sps:$4 sm:$0xff]  }
  0xa2   :  { %639 = vmatpush1.bf16.msra.mxu1 %v2666_v62  ;;  %v2688_v62 = vld [vmem:[#allocation7 + $0x8] ss:$16 sps:$4 sm:$0xff]  }
  0xa3   :  { %640 = vmatprep.subr.bf16.mxu1 %v2670_v63 }
  0xa4   :  { %678 = vmatpush1.bf16.msra.mxu0 %v2613_v52  ;;  %v2748_v52 = vld [vmem:[#allocation11 + $0xc0] ss:$8 sps:$4 sm:$0xff]  }
  0xa5   :  { %679 = vmatprep.subr.bf16.mxu0 %v2621_v53  ;;  %v2753_v53 = vld [vmem:[#allocation11 + $0xd4] ss:$8 sps:$4 sm:$0xff]  }
  0xa6   :  { %641 = vmatpush1.bf16.msra.mxu1 %v2672_v2  ;;  %v2696_v2 = vld [vmem:[#allocation7 + $0x4c] ss:$16 sps:$4 sm:$0xff]  }
  0xa7   :  { %642 = vmatprep.subr.bf16.mxu1 %v2676_v3  ;;  %v2694_v3 = vld [vmem:[#allocation7 + $0x48] ss:$16 sps:$4 sm:$0xff]  }
  0xa8   :  { %680 = vmatpush1.bf16.msra.mxu0 %v2619_v55  ;;  %v2273_v55 = vld [vmem:[%s3393_s3] ss:$0 sm:$0xff] }
  0xa9   :  { %681 = vmatprep.subr.bf16.mxu0 %v2627_v56 }
  0xaa   :  { %643 = vmatpush1.bf16.msra.mxu1 %v2678_v6  ;;  %v2702_v6 = vld [vmem:[#allocation7 + $0x8c] ss:$16 sps:$4 sm:$0xff]  }
  0xab   :  { %644 = vmatprep.subr.bf16.mxu1 %v2682_v20 }
  0xac   :  { %682 = vmatpush1.bf16.msra.mxu0 %v2625_v60 }
  0xad   :  { %683 = vmatprep.subr.bf16.mxu0 %v2633_v61 }
  0xae   :  { %645 = vmatpush1.bf16.msra.mxu1 %v2684_v21 }
  0xaf   :  { %1174 = vmatprep.subr.bf16.mxu1 %v2714_v28 }
  0xb0   :  { %684 = vmatpush1.bf16.msra.mxu0 %v2631_v0  ;;  %v2693_v0 = vld [vmem:[#allocation7 + $0x2c] ss:$16 sps:$4 sm:$0xff]  }
  0xb1   :  { %685 = vmatprep.subr.bf16.mxu0 %v2639_v1  ;;  %647 = vmatmul.mubr.bf16.vlgmr.msra.gmra.mrb[0].mxu1 %v292_v8  ;;  %v2691_v1 = vld [vmem:[#allocation7 + $0x28] ss:$16 sps:$4 sm:$0xff]  }
  0xb2   :  { %1175 = vmatpush1.bf16.msra.mxu1 %v2712_v27 }
  0xb3   :  { %1176 = vmatprep.subr.bf16.mxu1 %v2717_v29  ;;  %v3313_v29 = vld [vmem:[#allocation10] sm:$0xf] }
  0xb4   :  { %686 = vmatpush1.bf16.msra.mxu0 %v2637_v4  ;;  %v2699_v4 = vld [vmem:[#allocation7 + $0x6c] ss:$16 sps:$4 sm:$0xff]  }
  0xb5   :  { %856 = vmatprep.subr.bf16.mxu0 %v2645_v5  ;;  %v2697_v5 = vld [vmem:[#allocation7 + $0x68] ss:$16 sps:$4 sm:$0xff]  }
  0xb6   :  { %1177 = vmatpush1.bf16.msra.mxu1 %v2715_v30 }
  0xb7   :  { %688 = vmatmul.mubr.bf16.vlgmr.msra.gmra.mrb[4].mxu0 %v292_v8  ;;  %1178 = vmatprep.subr.bf16.mxu1 %v2720_v31  ;;  %v2705_v8 = vld [vmem:[#allocation7 + $0xac] ss:$16 sps:$4 sm:$0xff]  }
  0xb8   :  { %857 = vmatpush1.bf16.msra.mxu0 %v2643_v7  ;;  %888 = vmatprep.mubr.bf16.mxu0 %v3152_v26  ;;  %v2700_v7 = vld [vmem:[#allocation7 + $0x88] ss:$16 sps:$4 sm:$0xff]  }
  0xb9   :  { %858 = vmatprep.subr.bf16.mxu0 %v2651_v9  ;;  %v2703_v9 = vld [vmem:[#allocation7 + $0xa8] ss:$16 sps:$4 sm:$0xff]  }
  0xba   :  { %1179 = vmatpush1.bf16.msra.mxu1 %v2718_v32 }
  0xbb   :  { %1180 = vmatprep.subr.bf16.mxu1 %v2723_v33  ;;  %v2760_v33 = vld [vmem:[#allocation11 + $0x100] ss:$8 sps:$4 sm:$0xff]  }
  0xbc   :  { %859 = vmatpush1.bf16.msra.mxu0 %v2649_v10  ;;  %v2708_v10 = vld [vmem:[#allocation7 + $0xcc] ss:$16 sps:$4 sm:$0xff]  }
  0xbd   :  { %860 = vmatprep.subr.bf16.mxu0 %v2657_v11  ;;  %v2706_v11 = vld [vmem:[#allocation7 + $0xc8] ss:$16 sps:$4 sm:$0xff]  }
  0xbe   :  { %1181 = vmatpush1.bf16.msra.mxu1 %v2721_v34  ;;  %v2762_v34 = vld [vmem:[#allocation11 + $0x104] ss:$8 sps:$4 sm:$0xff]  }
  0xbf   :  { %1182 = vmatprep.subr.bf16.mxu1 %v2726_v35  ;;  %v2765_v35 = vld [vmem:[#allocation11 + $0x114] ss:$8 sps:$4 sm:$0xff]  }
  0xc0   :  { %861 = vmatpush1.bf16.msra.mxu0 %v2655_v12  ;;  %v2711_v12 = vld [vmem:[#allocation7 + $0xec] ss:$16 sps:$4 sm:$0xff]  }
  0xc1   :  { %862 = vmatprep.subr.bf16.mxu0 %v2663_v13  ;;  %v2709_v13 = vld [vmem:[#allocation7 + $0xe8] ss:$16 sps:$4 sm:$0xff]  }
  0xc2   :  { %1183 = vmatpush1.bf16.msra.mxu1 %v2724_v36  ;;  %v2763_v36 = vld [vmem:[#allocation11 + $0x110] ss:$8 sps:$4 sm:$0xff]  }
  0xc3   :  { %1184 = vmatprep.subr.bf16.mxu1 %v2729_v38  ;;  %v2766_v38 = vld [vmem:[#allocation11 + $0x120] ss:$8 sps:$4 sm:$0xff]  }
  0xc4   :  { %863 = vmatpush1.bf16.msra.mxu0 %v2661_v14 }
  0xc5   :  { %864 = vmatprep.subr.bf16.mxu0 %v2669_v15 }
  0xc6   :  { %1185 = vmatpush1.bf16.msra.mxu1 %v2727_v37  ;;  %v2768_v37 = vld [vmem:[#allocation11 + $0x124] ss:$8 sps:$4 sm:$0xff]  }
  0xc7   :  { %1186 = vmatprep.subr.bf16.mxu1 %v2732_v39  ;;  %v2771_v39 = vld [vmem:[#allocation11 + $0x134] ss:$8 sps:$4 sm:$0xff]  }
  0xc8   :  { %865 = vmatpush1.bf16.msra.mxu0 %v2667_v16 }
  0xc9   :  { %866 = vmatprep.subr.bf16.mxu0 %v2675_v17 }
  0xca   :  { %1187 = vmatpush1.bf16.msra.mxu1 %v2730_v40  ;;  %v2769_v40 = vld [vmem:[#allocation11 + $0x130] ss:$8 sps:$4 sm:$0xff]  }
  0xcb   :  { %1188 = vmatprep.subr.bf16.mxu1 %v2735_v41  ;;  %v2774_v41 = vld [vmem:[#allocation11 + $0x144] ss:$8 sps:$4 sm:$0xff]  }
  0xcc   :  { %867 = vmatpush1.bf16.msra.mxu0 %v2673_v18 }
  0xcd   :  { %868 = vmatprep.subr.bf16.mxu0 %v2681_v19 }
  0xce   :  { %1189 = vmatpush1.bf16.msra.mxu1 %v2733_v42  ;;  %v2772_v42 = vld [vmem:[#allocation11 + $0x140] ss:$8 sps:$4 sm:$0xff]  }
  0xcf   :  { %1190 = vmatprep.subr.bf16.mxu1 %v2738_v43  ;;  %v2777_v43 = vld [vmem:[#allocation11 + $0x154] ss:$8 sps:$4 sm:$0xff]  }
  0xd0   :  { %869 = vmatpush1.bf16.msra.mxu0 %v2679_v22  ;;  %v2756_v22 = vld [vmem:[#allocation11 + $0xe4] ss:$8 sps:$4 sm:$0xff]  }
  0xd1   :  { %870 = vmatprep.subr.bf16.mxu0 %v2687_v23  ;;  %v2754_v23 = vld [vmem:[#allocation11 + $0xe0] ss:$8 sps:$4 sm:$0xff]  }
  0xd2   :  { %1191 = vmatpush1.bf16.msra.mxu1 %v2736_v44  ;;  %v2775_v44 = vld [vmem:[#allocation11 + $0x150] ss:$8 sps:$4 sm:$0xff]  }
  0xd3   :  { %1192 = vmatprep.subr.bf16.mxu1 %v2741_v45  ;;  %v2780_v45 = vld [vmem:[#allocation11 + $0x164] ss:$8 sps:$4 sm:$0xff]  }
  0xd4   :  { %871 = vmatpush1.bf16.msra.mxu0 %v2685_v24  ;;  %v2759_v24 = vld [vmem:[#allocation11 + $0xf4] ss:$8 sps:$4 sm:$0xff]  }
  0xd5   :  { %897 = vmatprep.subr.bf16.mxu0 %v2690_v25  ;;  %v2757_v25 = vld [vmem:[#allocation11 + $0xf0] ss:$8 sps:$4 sm:$0xff]  }
  0xd6   :  { %1193 = vmatpush1.bf16.msra.mxu1 %v2739_v46  ;;  %v2778_v46 = vld [vmem:[#allocation11 + $0x160] ss:$8 sps:$4 sm:$0xff]  }
  0xd7   :  { %1194 = vmatprep.subr.bf16.mxu1 %v2744_v47  ;;  %v2783_v47 = vld [vmem:[#allocation11 + $0x174] ss:$8 sps:$4 sm:$0xff]  }
  0xda   :  { %1195 = vmatpush1.bf16.msra.mxu1 %v2742_v48  ;;  %v2781_v48 = vld [vmem:[#allocation11 + $0x170] ss:$8 sps:$4 sm:$0xff]  }
  0xdb   :  { %1196 = vmatprep.subr.bf16.mxu1 %v2747_v49  ;;  %v2786_v49 = vld [vmem:[#allocation11 + $0x184] ss:$8 sps:$4 sm:$0xff]  }
  0xde   :  { %1197 = vmatpush1.bf16.msra.mxu1 %v2745_v50  ;;  %v2784_v50 = vld [vmem:[#allocation11 + $0x180] ss:$8 sps:$4 sm:$0xff]  }
  0xdf   :  { %1198 = vmatprep.subr.bf16.mxu1 %v2750_v51  ;;  %v2789_v51 = vld [vmem:[#allocation11 + $0x194] ss:$8 sps:$4 sm:$0xff]  }
  0xe2   :  { %1199 = vmatpush1.bf16.msra.mxu1 %v2748_v52  ;;  %v2787_v52 = vld [vmem:[#allocation11 + $0x190] ss:$8 sps:$4 sm:$0xff]  }
  0xe3   :  { %1200 = vmatprep.subr.bf16.mxu1 %v2753_v53  ;;  %v2792_v53 = vld [vmem:[#allocation11 + $0x1a4] ss:$8 sps:$4 sm:$0xff]  }
  0xe6   :  { %1201 = vmatpush1.bf16.msra.mxu1 %v2751_v54  ;;  %v2790_v54 = vld [vmem:[#allocation11 + $0x1a0] ss:$8 sps:$4 sm:$0xff]  }
  0xe7   :  { %1202 = vmatprep.subr.bf16.mxu1 %v2756_v22 }
  0xea   :  { %1203 = vmatpush1.bf16.msra.mxu1 %v2754_v23  ;;  %v2804_v23 = vld [vmem:[#allocation11 + $0x1e4] ss:$8 sps:$4 sm:$0xff]  }
  0xeb   :  { %1204 = vmatprep.subr.bf16.mxu1 %v2759_v24  ;;  %v2802_v24 = vld [vmem:[#allocation11 + $0x1e0] ss:$8 sps:$4 sm:$0xff]  }
  0xee   :  { %1205 = vmatpush1.bf16.msra.mxu1 %v2757_v25  ;;  %v2807_v25 = vld [vmem:[#allocation11 + $0x1f4] ss:$8 sps:$4 sm:$0xff]  }
 0x14a   :  { %v177_v56 = vpop.f32.mrb[0].mxu0 }
 0x14b   :  { %v178_v57 = vadd.f32 %v2273_v55, %v177_v56  ;;  %v2549_v58 = vpop.f32.mrb[1].mxu0  ;;  %v2795_v55 = vld [vmem:[#allocation11 + $0x1b4] ss:$8 sps:$4 sm:$0xff]   ;;  %v2793_v56 = vld [vmem:[#allocation11 + $0x1b0] ss:$8 sps:$4 sm:$0xff]  }
 0x14c   :  { %v180_v59 = vpop.f32.mrb[2].mxu0  ;;  %v2796_v58 = vld [vmem:[#allocation11 + $0x1c0] ss:$8 sps:$4 sm:$0xff]  }
 0x14d   :  { %v183_v60 = vmax.f32 %v178_v57, 0.0  ;;  %v2550_v61 = vpop.f32.mrb[3].mxu0  ;;  %v2798_v57 = vld [vmem:[#allocation11 + $0x1c4] ss:$8 sps:$4 sm:$0xff]   ;;  %v2801_v59 = vld [vmem:[#allocation11 + $0x1d4] ss:$8 sps:$4 sm:$0xff]  }
 0x14f   :  { %v216_v63 = vpack.c.bf16 %v183_v60, %v183_v60  ;;  %v2799_v60 = vld [vmem:[#allocation11 + $0x1d0] ss:$8 sps:$4 sm:$0xff]  }
 0x151   :  { %889 = vmatmul.mubr.bf16.vlgmr.msra.gmra.mrb[8].mxu0 %v216_v63 }
 0x152   :  { %898 = vmatpush1.bf16.msra.mxu0 %v2688_v62  ;;  %929 = vmatprep.mubr.bf16.mxu0 %v3152_v26  ;;  %v940_v26 = vlaneseq }
 0x153   :  { %899 = vmatprep.subr.bf16.mxu0 %v2693_v0 }
 0x154   :  { %v941_v27 = vshrl.u32 %v940_v26, 7  ;;  %v2805_v26 = vld [vmem:[#allocation11 + $0x1f0] ss:$8 sps:$4 sm:$0xff]  }
 0x156   :  { %900 = vmatpush1.bf16.msra.mxu0 %v2691_v1  ;;  %v950_v28 = vsub.s32 2, %v941_v27  ;;  %v954_v30 = vsub.s32 3, %v941_v27  ;;  %v3321_v61 = vsub.s32 0, %v941_v27  ;;  %v3323_v62 = vsub.s32 1, %v941_v27  ;;  %v2856_v27 = vld [vmem:[#allocation11 + $0x200] ss:$8 sps:$4 sm:$0xff]  }
 0x157   :  { %901 = vmatprep.subr.bf16.mxu0 %v2696_v2 }
 0x158   :  { %v3316_v31 = vrot.slane %v3313_v29, %v950_v28  ;;  %v3319_v32 = vrot.slane %v3313_v29, %v954_v30  ;;  %v947_v1 = vrot.slane %v3313_v29, %v3323_v62  ;;  %v2861_v28 = vld [vmem:[#allocation11 + $0x214] ss:$8 sps:$4 sm:$0xff]   ;;  %v2864_v30 = vld [vmem:[#allocation11 + $0x224] ss:$8 sps:$4 sm:$0xff]  }
 0x15a   :  { %902 = vmatpush1.bf16.msra.mxu0 %v2694_v3 }
 0x15b   :  { %903 = vmatprep.subr.bf16.mxu0 %v2699_v4 }
 0x15e   :  { %904 = vmatpush1.bf16.msra.mxu0 %v2697_v5 }
 0x15f   :  { %905 = vmatprep.subr.bf16.mxu0 %v2702_v6 }
 0x162   :  { %906 = vmatpush1.bf16.msra.mxu0 %v2700_v7 }
 0x163   :  { %907 = vmatprep.subr.bf16.mxu0 %v2705_v8 }
 0x166   :  { %908 = vmatpush1.bf16.msra.mxu0 %v2703_v9 }
 0x167   :  { %909 = vmatprep.subr.bf16.mxu0 %v2708_v10 }
 0x16a   :  { %910 = vmatpush1.bf16.msra.mxu0 %v2706_v11 }
 0x16b   :  { %911 = vmatprep.subr.bf16.mxu0 %v2711_v12 }
 0x16e   :  { %912 = vmatpush1.bf16.msra.mxu0 %v2709_v13 }
 0x16f   :  { %1425 = vmatprep.subr.bf16.mxu0 %v2762_v34  ;;  %v2870_v34 = vld [vmem:[#allocation11 + $0x244] ss:$8 sps:$4 sm:$0xff]  }
 0x171   :  { %930 = vmatmul.mubr.bf16.vlgmr.msra.gmra.mrb[12].mxu0 %v216_v63  ;;  %v943_v63 = vrot.slane %v3313_v29, %v3321_v61  ;;  %v2859_v29 = vld [vmem:[#allocation11 + $0x210] ss:$8 sps:$4 sm:$0xff]  }
 0x172   :  { %1426 = vmatpush1.bf16.msra.mxu0 %v2760_v33  ;;  %v2865_v33 = vld [vmem:[#allocation11 + $0x230] ss:$8 sps:$4 sm:$0xff]  }
 0x173   :  { %1427 = vmatprep.subr.bf16.mxu0 %v2765_v35  ;;  %v2868_v35 = vld [vmem:[#allocation11 + $0x240] ss:$8 sps:$4 sm:$0xff]  }
 0x176   :  { %1428 = vmatpush1.bf16.msra.mxu0 %v2763_v36  ;;  %v2873_v36 = vld [vmem:[#allocation11 + $0x254] ss:$8 sps:$4 sm:$0xff]  }
 0x177   :  { %1429 = vmatprep.subr.bf16.mxu0 %v2768_v37  ;;  %v2871_v37 = vld [vmem:[#allocation11 + $0x250] ss:$8 sps:$4 sm:$0xff]  }
 0x17a   :  { %1430 = vmatpush1.bf16.msra.mxu0 %v2766_v38  ;;  %v2876_v38 = vld [vmem:[#allocation11 + $0x264] ss:$8 sps:$4 sm:$0xff]  }
 0x17b   :  { %1431 = vmatprep.subr.bf16.mxu0 %v2771_v39  ;;  %v2874_v39 = vld [vmem:[#allocation11 + $0x260] ss:$8 sps:$4 sm:$0xff]  }
 0x17e   :  { %1432 = vmatpush1.bf16.msra.mxu0 %v2769_v40  ;;  %v2879_v40 = vld [vmem:[#allocation11 + $0x274] ss:$8 sps:$4 sm:$0xff]  }
 0x17f   :  { %1433 = vmatprep.subr.bf16.mxu0 %v2774_v41  ;;  %v2877_v41 = vld [vmem:[#allocation11 + $0x270] ss:$8 sps:$4 sm:$0xff]  }
 0x182   :  { %1434 = vmatpush1.bf16.msra.mxu0 %v2772_v42  ;;  %v2882_v42 = vld [vmem:[#allocation11 + $0x284] ss:$8 sps:$4 sm:$0xff]  }
 0x183   :  { %1435 = vmatprep.subr.bf16.mxu0 %v2777_v43  ;;  %v2880_v43 = vld [vmem:[#allocation11 + $0x280] ss:$8 sps:$4 sm:$0xff]  }
 0x184   :  { %v3309_v18 = vpop.f32.mrb[0].mxu1 }
 0x185   :  { %v3311_v19 = vpop.f32.mrb[1].mxu1 }
 0x186   :  { %v652_v20 = vpop.f32.mrb[2].mxu1  ;;  %1436 = vmatpush1.bf16.msra.mxu0 %v2775_v44  ;;  %v2885_v44 = vld [vmem:[#allocation11 + $0x294] ss:$8 sps:$4 sm:$0xff]  }
 0x187   :  { %v653_v21 = vpop.f32.mrb[3].mxu1  ;;  %1437 = vmatprep.subr.bf16.mxu0 %v2780_v45  ;;  %v2883_v45 = vld [vmem:[#allocation11 + $0x290] ss:$8 sps:$4 sm:$0xff]  }
 0x18a   :  { %v3305_v14 = vpop.f32.mrb[4].mxu0  ;;  %1438 = vmatpush1.bf16.msra.mxu0 %v2778_v46  ;;  %v2888_v46 = vld [vmem:[#allocation11 + $0x2a4] ss:$8 sps:$4 sm:$0xff]  }
 0x18b   :  { %v3307_v15 = vpop.f32.mrb[5].mxu0  ;;  %1439 = vmatprep.subr.bf16.mxu0 %v2783_v47  ;;  %v2886_v47 = vld [vmem:[#allocation11 + $0x2a0] ss:$8 sps:$4 sm:$0xff]  }
 0x18c   :  { %v693_v16 = vpop.f32.mrb[6].mxu0 }
 0x18d   :  { %v694_v17 = vpop.f32.mrb[7].mxu0 }
 0x18e   :  { %1440 = vmatpush1.bf16.msra.mxu0 %v2781_v48  ;;  %v2891_v48 = vld [vmem:[#allocation11 + $0x2b4] ss:$8 sps:$4 sm:$0xff]  }
 0x18f   :  { %1441 = vmatprep.subr.bf16.mxu0 %v2786_v49  ;;  %v2889_v49 = vld [vmem:[#allocation11 + $0x2b0] ss:$8 sps:$4 sm:$0xff]  }
 0x192   :  { %1442 = vmatpush1.bf16.msra.mxu0 %v2784_v50  ;;  %v2894_v50 = vld [vmem:[#allocation11 + $0x2c4] ss:$8 sps:$4 sm:$0xff]  }
 0x193   :  { %1443 = vmatprep.subr.bf16.mxu0 %v2789_v51  ;;  %v2892_v51 = vld [vmem:[#allocation11 + $0x2c0] ss:$8 sps:$4 sm:$0xff]  }
 0x196   :  { %1444 = vmatpush1.bf16.msra.mxu0 %v2787_v52  ;;  %v2897_v52 = vld [vmem:[#allocation11 + $0x2d4] ss:$8 sps:$4 sm:$0xff]  }
 0x197   :  { %1445 = vmatprep.subr.bf16.mxu0 %v2792_v53  ;;  %v1002_v53 = vld [vmem:[%s3398_s8] sm:$0x3] }
 0x19a   :  { %1446 = vmatpush1.bf16.msra.mxu0 %v2790_v54  ;;  %v2895_v54 = vld [vmem:[#allocation11 + $0x2d0] ss:$8 sps:$4 sm:$0xff]  }
 0x19b   :  { %1447 = vmatprep.subr.bf16.mxu0 %v2795_v55  ;;  %v1007_v55 = vrot.slane %v1002_v53, %v3321_v61 }
 0x19e   :  { %1448 = vmatpush1.bf16.msra.mxu0 %v2793_v56  ;;  %v1011_v56 = vrot.slane %v1002_v53, %v3323_v62 }
 0x19f   :  { %1449 = vmatprep.subr.bf16.mxu0 %v2798_v57 }
 0x1a2   :  { %1450 = vmatpush1.bf16.msra.mxu0 %v2796_v58 }
 0x1a3   :  { %1451 = vmatprep.subr.bf16.mxu0 %v2801_v59 }
 0x1a6   :  { %1452 = vmatpush1.bf16.msra.mxu0 %v2799_v60 }
 0x1a7   :  { %1453 = vmatprep.subr.bf16.mxu0 %v2804_v23  ;;  %v2831_v23 = vld [vmem:[#allocation11 + $0x374] ss:$8 sps:$4 sm:$0xff]  }
 0x1aa   :  { %1454 = vmatpush1.bf16.msra.mxu0 %v2802_v24  ;;  %v2829_v24 = vld [vmem:[#allocation11 + $0x370] ss:$8 sps:$4 sm:$0xff]  }
 0x1ab   :  { %1455 = vmatprep.subr.bf16.mxu0 %v2807_v25  ;;  %v2834_v25 = vld [vmem:[#allocation11 + $0x384] ss:$8 sps:$4 sm:$0xff]  }
 0x1ae   :  { %1456 = vmatpush1.bf16.msra.mxu0 %v2805_v26  ;;  %v2832_v26 = vld [vmem:[#allocation11 + $0x380] ss:$8 sps:$4 sm:$0xff]  }
 0x224   :  { %v890_v0 = vpop.f32.mrb[8].mxu0 }
 0x225   :  { %v891_v2 = vadd.f32 %v890_v0, %v3309_v18  ;;  %v892_v3 = vpop.f32.mrb[9].mxu0 }
 0x226   :  { %v893_v4 = vadd.f32 %v892_v3, %v3311_v19  ;;  %v894_v5 = vpop.f32.mrb[10].mxu0 }
 0x227   :  { %v960_v6 = vadd.f32 %v943_v63, %v891_v2  ;;  %v895_v7 = vpop.f32.mrb[11].mxu0  ;;  %v2808_v5 = vld [vmem:[#allocation11 + $0x300] ss:$8 sps:$4 sm:$0xff]  }
 0x228   :  { %v961_v8 = vadd.f32 %v947_v1, %v893_v4  ;;  %v2813_v7 = vld [vmem:[#allocation11 + $0x314] ss:$8 sps:$4 sm:$0xff]  }
 0x229   :  { %v964_v9 = vmax.f32 %v960_v6, 0.0 }
 0x22a   :  { %v965_v10 = vmax.f32 %v961_v8, 0.0 }
 0x22b   :  { %v1000_v12 = vpack.c.bf16 %v964_v9, %v964_v9  ;;  %v2811_v9 = vld [vmem:[#allocation11 + $0x310] ss:$8 sps:$4 sm:$0xff]  }
 0x22c   :  { %v1001_v11 = vpack.c.bf16 %v965_v10, %v965_v10  ;;  %v2816_v10 = vld [vmem:[#allocation11 + $0x324] ss:$8 sps:$4 sm:$0xff]  }
 0x22e   :  { %1206 = vmatprep.mubr.bf16.mxu1 %v1001_v11  ;;  %v2814_v11 = vld [vmem:[#allocation11 + $0x320] ss:$8 sps:$4 sm:$0xff]  }
 0x22f   :  { %1207 = vmatmul.mubr.bf16.vlgmr.msra.gmra.mrb[4].mxu1 %v1000_v12  ;;  %v2819_v12 = vld [vmem:[#allocation11 + $0x334] ss:$8 sps:$4 sm:$0xff]  }
 0x244   :  { %v931_v13 = vpop.f32.mrb[12].mxu0 }
 0x245   :  { %v932_v16 = vadd.f32 %v931_v13, %v3305_v14  ;;  %v933_v17 = vpop.f32.mrb[13].mxu0  ;;  %v2810_v14 = vld [vmem:[#allocation11 + $0x304] ss:$8 sps:$4 sm:$0xff]   ;;  %v2817_v13 = vld [vmem:[#allocation11 + $0x330] ss:$8 sps:$4 sm:$0xff]  }
 0x246   :  { %v934_v20 = vadd.f32 %v933_v17, %v3307_v15  ;;  %v935_v18 = vpop.f32.mrb[14].mxu0  ;;  %1937 = vmatprep.subr.bf16.mxu0 %v2810_v14  ;;  %v2858_v15 = vld [vmem:[#allocation11 + $0x204] ss:$8 sps:$4 sm:$0xff]   ;;  %v2820_v17 = vld [vmem:[#allocation11 + $0x340] ss:$8 sps:$4 sm:$0xff]  }
 0x247   :  { %v3334_v21 = vadd.f32 %v3316_v31, %v932_v16  ;;  %v936_v19 = vpop.f32.mrb[15].mxu0  ;;  %1676 = vmatprep.subr.bf16.mxu1 %v2858_v15  ;;  %v2862_v31 = vld [vmem:[#allocation11 + $0x220] ss:$8 sps:$4 sm:$0xff]   ;;  %v2822_v16 = vld [vmem:[#allocation11 + $0x344] ss:$8 sps:$4 sm:$0xff]  }
 0x248   :  { %v3337_v22 = vadd.f32 %v3319_v32, %v934_v20  ;;  %1677 = vmatpush1.bf16.msra.mxu1 %v2856_v27  ;;  %v2867_v32 = vld [vmem:[#allocation11 + $0x234] ss:$8 sps:$4 sm:$0xff]   ;;  %v2823_v18 = vld [vmem:[#allocation11 + $0x350] ss:$8 sps:$4 sm:$0xff]   ;;  %v2828_v19 = vld [vmem:[#allocation11 + $0x364] ss:$8 sps:$4 sm:$0xff]  }
 0x249   :  { %1678 = vmatprep.subr.bf16.mxu1 %v2861_v28  ;;  %v2825_v20 = vld [vmem:[#allocation11 + $0x354] ss:$8 sps:$4 sm:$0xff]   ;;  %v2835_v27 = vld [vmem:[#allocation11 + $0x390] ss:$8 sps:$4 sm:$0xff]   ;;  %v2840_v15 = vld [vmem:[#allocation11 + $0x3a4] ss:$8 sps:$4 sm:$0xff]  }
 0x24a   :  { %v967_v2 = vmax.f32 %v3337_v22, 0.0  ;;  %v2826_v22 = vld [vmem:[#allocation11 + $0x360] ss:$8 sps:$4 sm:$0xff]   ;;  %v2837_v14 = vld [vmem:[#allocation11 + $0x394] ss:$8 sps:$4 sm:$0xff]  }
 0x24b   :  { %v2838_v28 = vld [vmem:[#allocation11 + $0x3a0] ss:$8 sps:$4 sm:$0xff]  }
 0x24c   :  { %1679 = vmatpush1.bf16.msra.mxu1 %v2859_v29  ;;  %v1763_v8 = vpack.c.bf16 %v967_v2, %v967_v2  ;;  %v2843_v29 = vld [vmem:[#allocation11 + $0x3b4] ss:$8 sps:$4 sm:$0xff]   ;;  %v2913_v2 = vld [vmem:[#allocation11 + $0x430] ss:$8 sps:$4 sm:$0xff]  }
 0x24d   :  { %1680 = vmatprep.subr.bf16.mxu1 %v2864_v30  ;;  %v2841_v30 = vld [vmem:[#allocation11 + $0x3b0] ss:$8 sps:$4 sm:$0xff]  }
 0x250   :  { %1681 = vmatpush1.bf16.msra.mxu1 %v2862_v31  ;;  %v2846_v31 = vld [vmem:[#allocation11 + $0x3c4] ss:$8 sps:$4 sm:$0xff]  }
 0x251   :  { %1682 = vmatprep.subr.bf16.mxu1 %v2867_v32  ;;  %v2844_v32 = vld [vmem:[#allocation11 + $0x3c0] ss:$8 sps:$4 sm:$0xff]  }
 0x254   :  { %1683 = vmatpush1.bf16.msra.mxu1 %v2865_v33  ;;  %v2849_v33 = vld [vmem:[#allocation11 + $0x3d4] ss:$8 sps:$4 sm:$0xff]  }
 0x255   :  { %1684 = vmatprep.subr.bf16.mxu1 %v2870_v34  ;;  %v2847_v34 = vld [vmem:[#allocation11 + $0x3d0] ss:$8 sps:$4 sm:$0xff]  }
 0x258   :  { %1685 = vmatpush1.bf16.msra.mxu1 %v2868_v35  ;;  %v2852_v35 = vld [vmem:[#allocation11 + $0x3e4] ss:$8 sps:$4 sm:$0xff]  }
 0x259   :  { %1686 = vmatprep.subr.bf16.mxu1 %v2873_v36  ;;  %v2850_v36 = vld [vmem:[#allocation11 + $0x3e0] ss:$8 sps:$4 sm:$0xff]  }
 0x25c   :  { %1687 = vmatpush1.bf16.msra.mxu1 %v2871_v37  ;;  %v2855_v37 = vld [vmem:[#allocation11 + $0x3f4] ss:$8 sps:$4 sm:$0xff]  }
 0x25d   :  { %1688 = vmatprep.subr.bf16.mxu1 %v2876_v38  ;;  %v2853_v38 = vld [vmem:[#allocation11 + $0x3f0] ss:$8 sps:$4 sm:$0xff]  }
 0x260   :  { %1689 = vmatpush1.bf16.msra.mxu1 %v2874_v39  ;;  %v966_v39 = vmax.f32 %v3334_v21, 0.0 }
 0x261   :  { %1690 = vmatprep.subr.bf16.mxu1 %v2879_v40 }
 0x262   :  { %v1762_v40 = vpack.c.bf16 %v966_v39, %v966_v39 }
 0x264   :  { %1691 = vmatpush1.bf16.msra.mxu1 %v2877_v41  ;;  %v2900_v41 = vld [vmem:[#allocation11 + $0x2e4] ss:$8 sps:$4 sm:$0xff]  }
 0x265   :  { %1692 = vmatprep.subr.bf16.mxu1 %v2882_v42  ;;  %v2898_v42 = vld [vmem:[#allocation11 + $0x2e0] ss:$8 sps:$4 sm:$0xff]  }
 0x268   :  { %1693 = vmatpush1.bf16.msra.mxu1 %v2880_v43  ;;  %v2903_v43 = vld [vmem:[#allocation11 + $0x2f4] ss:$8 sps:$4 sm:$0xff]  }
 0x269   :  { %1694 = vmatprep.subr.bf16.mxu1 %v2885_v44  ;;  %v2901_v44 = vld [vmem:[#allocation11 + $0x2f0] ss:$8 sps:$4 sm:$0xff]  }
 0x26c   :  { %1695 = vmatpush1.bf16.msra.mxu1 %v2883_v45  ;;  %v2906_v45 = vld [vmem:[#allocation11 + $0x404] ss:$8 sps:$4 sm:$0xff]  }
 0x26d   :  { %1696 = vmatprep.subr.bf16.mxu1 %v2888_v46  ;;  %v2406_v46 = vld [vmem:[%s3398_s8 + $0x2] sm:$0x3] }
 0x26e   :  { %v1258_v21 = vrot.slane %v2406_v46, %v3321_v61 }
 0x270   :  { %1697 = vmatpush1.bf16.msra.mxu1 %v2886_v47  ;;  %v1262_v47 = vrot.slane %v2406_v46, %v3323_v62 }
 0x271   :  { %1698 = vmatprep.subr.bf16.mxu1 %v2891_v48 }
 0x274   :  { %1699 = vmatpush1.bf16.msra.mxu1 %v2889_v49 }
 0x275   :  { %1700 = vmatprep.subr.bf16.mxu1 %v2894_v50 }
 0x278   :  { %1701 = vmatpush1.bf16.msra.mxu1 %v2892_v51 }
 0x279   :  { %1702 = vmatprep.subr.bf16.mxu1 %v2897_v52 }
 0x27c   :  { %1703 = vmatpush1.bf16.msra.mxu1 %v2895_v54 }
 0x27d   :  { %1704 = vmatprep.subr.bf16.mxu1 %v2900_v41  ;;  %v2439_v41 = vld [vmem:[%s3398_s8 + $0x4] sm:$0x3] }
 0x280   :  { %1705 = vmatpush1.bf16.msra.mxu1 %v2898_v42  ;;  %v1509_v42 = vrot.slane %v2439_v41, %v3321_v61 }
 0x281   :  { %1706 = vmatprep.subr.bf16.mxu1 %v2903_v43  ;;  %v1513_v43 = vrot.slane %v2439_v41, %v3323_v62 }
 0x284   :  { %1707 = vmatpush1.bf16.msra.mxu1 %v2901_v44 }
 0x285   :  { %2188 = vmatprep.subr.bf16.mxu1 %v2906_v45 }
 0x302   :  { %v1208_v57 = vpop.f32.mrb[4].mxu1 }
 0x303   :  { %v1209_v58 = vadd.f32 %v1208_v57, %v1007_v55  ;;  %v1210_v59 = vpop.f32.mrb[5].mxu1  ;;  %v2904_v57 = vld [vmem:[#allocation11 + $0x400] ss:$8 sps:$4 sm:$0xff]  }
 0x304   :  { %v1211_v60 = vadd.f32 %v1210_v59, %v1011_v56  ;;  %v1212_v63 = vpop.f32.mrb[6].mxu1  ;;  %v2909_v59 = vld [vmem:[#allocation11 + $0x414] ss:$8 sps:$4 sm:$0xff]  }
 0x305   :  { %v1215_v0 = vmax.f32 %v1209_v58, 0.0  ;;  %v1213_v1 = vpop.f32.mrb[7].mxu1  ;;  %v2912_v63 = vld [vmem:[#allocation11 + $0x424] ss:$8 sps:$4 sm:$0xff]  }
 0x306   :  { %v1216_v3 = vmax.f32 %v1211_v60, 0.0  ;;  %v2907_v60 = vld [vmem:[#allocation11 + $0x410] ss:$8 sps:$4 sm:$0xff]   ;;  %v2915_v1 = vld [vmem:[#allocation11 + $0x434] ss:$8 sps:$4 sm:$0xff]  }
 0x307   :  { %v1250_v6 = vpack.c.bf16 %v1215_v0, %v1215_v0  ;;  %v2910_v0 = vld [vmem:[#allocation11 + $0x420] ss:$8 sps:$4 sm:$0xff]  }
 0x308   :  { %v1251_v4 = vpack.c.bf16 %v1216_v3, %v1216_v3  ;;  %v2918_v3 = vld [vmem:[#allocation11 + $0x444] ss:$8 sps:$4 sm:$0xff]  }
 0x30a   :  { %1457 = vmatprep.mubr.bf16.mxu0 %v1251_v4  ;;  %v2916_v4 = vld [vmem:[#allocation11 + $0x440] ss:$8 sps:$4 sm:$0xff]  }
 0x30b   :  { %1458 = vmatmul.mubr.bf16.vlgmr.msra.gmra.mrb[16].mxu0 %v1250_v6  ;;  %v2919_v6 = vld [vmem:[#allocation11 + $0x450] ss:$8 sps:$4 sm:$0xff]  }
 0x30c   :  { %1938 = vmatpush1.bf16.msra.mxu0 %v2808_v5  ;;  %1969 = vmatprep.mubr.bf16.mxu0 %v1763_v8  ;;  %v2921_v5 = vld [vmem:[#allocation11 + $0x454] ss:$8 sps:$4 sm:$0xff]   ;;  %v2922_v8 = vld [vmem:[#allocation11 + $0x460] ss:$8 sps:$4 sm:$0xff]  }
 0x30d   :  { %1939 = vmatprep.subr.bf16.mxu0 %v2813_v7  ;;  %v2924_v7 = vld [vmem:[#allocation11 + $0x464] ss:$8 sps:$4 sm:$0xff]  }
 0x310   :  { %1940 = vmatpush1.bf16.msra.mxu0 %v2811_v9  ;;  %v2927_v9 = vld [vmem:[#allocation11 + $0x474] ss:$8 sps:$4 sm:$0xff]  }
 0x311   :  { %1941 = vmatprep.subr.bf16.mxu0 %v2816_v10  ;;  %v2925_v10 = vld [vmem:[#allocation11 + $0x470] ss:$8 sps:$4 sm:$0xff]  }
 0x314   :  { %1942 = vmatpush1.bf16.msra.mxu0 %v2814_v11  ;;  %v2930_v11 = vld [vmem:[#allocation11 + $0x484] ss:$8 sps:$4 sm:$0xff]  }
 0x315   :  { %1943 = vmatprep.subr.bf16.mxu0 %v2819_v12  ;;  %v2928_v12 = vld [vmem:[#allocation11 + $0x480] ss:$8 sps:$4 sm:$0xff]  }
 0x318   :  { %1944 = vmatpush1.bf16.msra.mxu0 %v2817_v13  ;;  %v2933_v13 = vld [vmem:[#allocation11 + $0x494] ss:$8 sps:$4 sm:$0xff]  }
 0x319   :  { %1945 = vmatprep.subr.bf16.mxu0 %v2822_v16  ;;  %v2931_v16 = vld [vmem:[#allocation11 + $0x490] ss:$8 sps:$4 sm:$0xff]  }
 0x31c   :  { %1946 = vmatpush1.bf16.msra.mxu0 %v2820_v17  ;;  %v2936_v17 = vld [vmem:[#allocation11 + $0x4a4] ss:$8 sps:$4 sm:$0xff]  }
 0x31d   :  { %1947 = vmatprep.subr.bf16.mxu0 %v2825_v20  ;;  %v2934_v20 = vld [vmem:[#allocation11 + $0x4a0] ss:$8 sps:$4 sm:$0xff]  }
 0x320   :  { %1948 = vmatpush1.bf16.msra.mxu0 %v2823_v18  ;;  %v2939_v18 = vld [vmem:[#allocation11 + $0x4b4] ss:$8 sps:$4 sm:$0xff]  }
 0x321   :  { %1949 = vmatprep.subr.bf16.mxu0 %v2828_v19  ;;  %v2937_v19 = vld [vmem:[#allocation11 + $0x4b0] ss:$8 sps:$4 sm:$0xff]  }
 0x324   :  { %1950 = vmatpush1.bf16.msra.mxu0 %v2826_v22  ;;  %v2942_v22 = vld [vmem:[#allocation11 + $0x4c4] ss:$8 sps:$4 sm:$0xff]  }
 0x325   :  { %1951 = vmatprep.subr.bf16.mxu0 %v2831_v23  ;;  %v2940_v23 = vld [vmem:[#allocation11 + $0x4c0] ss:$8 sps:$4 sm:$0xff]  }
 0x328   :  { %1952 = vmatpush1.bf16.msra.mxu0 %v2829_v24  ;;  %v2945_v24 = vld [vmem:[#allocation11 + $0x4d4] ss:$8 sps:$4 sm:$0xff]  }
 0x329   :  { %1953 = vmatprep.subr.bf16.mxu0 %v2834_v25  ;;  %v2943_v25 = vld [vmem:[#allocation11 + $0x4d0] ss:$8 sps:$4 sm:$0xff]  }
 0x32c   :  { %1954 = vmatpush1.bf16.msra.mxu0 %v2832_v26  ;;  %v2473_v26 = vld [vmem:[%s3398_s8 + $0x6] sm:$0x3] }
 0x32d   :  { %1955 = vmatprep.subr.bf16.mxu0 %v2837_v14  ;;  %v2948_v14 = vld [vmem:[#allocation11 + $0x4e4] ss:$8 sps:$4 sm:$0xff]  }
 0x330   :  { %1956 = vmatpush1.bf16.msra.mxu0 %v2835_v27  ;;  %v1770_v27 = vrot.slane %v2473_v26, %v3321_v61 }
 0x331   :  { %1957 = vmatprep.subr.bf16.mxu0 %v2840_v15  ;;  %v1774_v15 = vrot.slane %v2473_v26, %v3323_v62 }
 0x334   :  { %1958 = vmatpush1.bf16.msra.mxu0 %v2838_v28  ;;  %v2946_v28 = vld [vmem:[#allocation11 + $0x4e0] ss:$8 sps:$4 sm:$0xff]  }
 0x335   :  { %1959 = vmatprep.subr.bf16.mxu0 %v2843_v29  ;;  %v2951_v29 = vld [vmem:[#allocation11 + $0x4f4] ss:$8 sps:$4 sm:$0xff]  }
 0x338   :  { %1960 = vmatpush1.bf16.msra.mxu0 %v2841_v30 }
 0x339   :  { %1961 = vmatprep.subr.bf16.mxu0 %v2846_v31 }
 0x33c   :  { %1962 = vmatpush1.bf16.msra.mxu0 %v2844_v32 }
 0x33d   :  { %1963 = vmatprep.subr.bf16.mxu0 %v2849_v33 }
 0x340   :  { %1964 = vmatpush1.bf16.msra.mxu0 %v2847_v34 }
 0x341   :  { %1965 = vmatprep.subr.bf16.mxu0 %v2852_v35  ;;  %v2949_v35 = vld [vmem:[#allocation11 + $0x4f0] ss:$8 sps:$4 sm:$0xff]  }
 0x344   :  { %1966 = vmatpush1.bf16.msra.mxu0 %v2850_v36 }
 0x345   :  { %1967 = vmatprep.subr.bf16.mxu0 %v2855_v37 }
 0x348   :  { %1968 = vmatpush1.bf16.msra.mxu0 %v2853_v38 }
 0x34b   :  { %1970 = vmatmul.mubr.bf16.vlgmr.msra.gmra.mrb[20].mxu0 %v1762_v40 }
 0x3de   :  { %v1459_v48 = vpop.f32.mrb[16].mxu0 }
 0x3df   :  { %v1460_v49 = vadd.f32 %v1459_v48, %v1258_v21  ;;  %v1461_v50 = vpop.f32.mrb[17].mxu0 }
 0x3e0   :  { %v1462_v51 = vadd.f32 %v1461_v50, %v1262_v47  ;;  %v1463_v52 = vpop.f32.mrb[18].mxu0 }
 0x3e1   :  { %v1466_v53 = vmax.f32 %v1460_v49, 0.0  ;;  %v1464_v54 = vpop.f32.mrb[19].mxu0 }
 0x3e2   :  { %v1467_v55 = vmax.f32 %v1462_v51, 0.0 }
 0x3e3   :  { %v1501_v58 = vpack.c.bf16 %v1466_v53, %v1466_v53 }
 0x3e4   :  { %v1502_v56 = vpack.c.bf16 %v1467_v55, %v1467_v55 }
 0x3e6   :  { %1708 = vmatprep.mubr.bf16.mxu1 %v1502_v56 }
 0x3e7   :  { %1709 = vmatmul.mubr.bf16.vlgmr.msra.gmra.mrb[8].mxu1 %v1501_v58 }
 0x3e8   :  { %2189 = vmatpush1.bf16.msra.mxu1 %v2904_v57 }
 0x3e9   :  { %2190 = vmatprep.subr.bf16.mxu1 %v2909_v59 }
 0x3ec   :  { %2191 = vmatpush1.bf16.msra.mxu1 %v2907_v60 }
 0x3ed   :  { %2192 = vmatprep.subr.bf16.mxu1 %v2912_v63 }
 0x3f0   :  { %2193 = vmatpush1.bf16.msra.mxu1 %v2910_v0 }
 0x3f1   :  { %2194 = vmatprep.subr.bf16.mxu1 %v2915_v1 }
 0x3f4   :  { %2195 = vmatpush1.bf16.msra.mxu1 %v2913_v2 }
 0x3f5   :  { %2196 = vmatprep.subr.bf16.mxu1 %v2918_v3 }
 0x3f8   :  { %2197 = vmatpush1.bf16.msra.mxu1 %v2916_v4 }
 0x3f9   :  { %2198 = vmatprep.subr.bf16.mxu1 %v2921_v5 }
 0x3fc   :  { %2199 = vmatpush1.bf16.msra.mxu1 %v2919_v6 }
 0x3fd   :  { %2200 = vmatprep.subr.bf16.mxu1 %v2924_v7 }
 0x400   :  { %2201 = vmatpush1.bf16.msra.mxu1 %v2922_v8 }
 0x401   :  { %2202 = vmatprep.subr.bf16.mxu1 %v2927_v9 }
 0x404   :  { %2203 = vmatpush1.bf16.msra.mxu1 %v2925_v10 }
 0x405   :  { %2204 = vmatprep.subr.bf16.mxu1 %v2930_v11 }
 0x408   :  { %2205 = vmatpush1.bf16.msra.mxu1 %v2928_v12 }
 0x409   :  { %2206 = vmatprep.subr.bf16.mxu1 %v2933_v13 }
 0x40c   :  { %2207 = vmatpush1.bf16.msra.mxu1 %v2931_v16 }
 0x40d   :  { %2208 = vmatprep.subr.bf16.mxu1 %v2936_v17 }
 0x410   :  { %2209 = vmatpush1.bf16.msra.mxu1 %v2934_v20 }
 0x411   :  { %2210 = vmatprep.subr.bf16.mxu1 %v2939_v18 }
 0x414   :  { %2211 = vmatpush1.bf16.msra.mxu1 %v2937_v19 }
 0x415   :  { %2212 = vmatprep.subr.bf16.mxu1 %v2942_v22 }
 0x418   :  { %2213 = vmatpush1.bf16.msra.mxu1 %v2940_v23 }
 0x419   :  { %2214 = vmatprep.subr.bf16.mxu1 %v2945_v24 }
 0x41c   :  { %2215 = vmatpush1.bf16.msra.mxu1 %v2943_v25 }
 0x41d   :  { %2216 = vmatprep.subr.bf16.mxu1 %v2948_v14 }
 0x41e   :  { %v1971_v30 = vpop.f32.mrb[20].mxu0 }
 0x41f   :  { %v1972_v31 = vadd.f32 %v1971_v30, %v1770_v27  ;;  %v1973_v32 = vpop.f32.mrb[21].mxu0 }
 0x420   :  { %v1974_v33 = vadd.f32 %v1973_v32, %v1774_v15  ;;  %v1975_v34 = vpop.f32.mrb[22].mxu0  ;;  %2217 = vmatpush1.bf16.msra.mxu1 %v2946_v28 }
 0x421   :  { %v1978_v36 = vmax.f32 %v1972_v31, 0.0  ;;  %v1976_v37 = vpop.f32.mrb[23].mxu0  ;;  %2218 = vmatprep.subr.bf16.mxu1 %v2951_v29 }
 0x422   :  { %v1979_v38 = vmax.f32 %v1974_v33, 0.0 }
 0x423   :  { %v2013_v40 = vpack.c.bf16 %v1978_v36, %v1978_v36 }
 0x424   :  { %v2014_v39 = vpack.c.bf16 %v1979_v38, %v1979_v38  ;;  %2219 = vmatpush1.bf16.msra.mxu1 %v2949_v35 }
 0x426   :  { %2220 = vmatprep.mubr.bf16.mxu1 %v2014_v39 }
 0x427   :  { %2221 = vmatmul.mubr.bf16.vlgmr.msra.gmra.mrb[12].mxu1 %v2013_v40 }
 0x4ba   :  { %v1710_v44 = vpop.f32.mrb[8].mxu1 }
 0x4bb   :  { %v1711_v45 = vadd.f32 %v1710_v44, %v1509_v42  ;;  %v1712_v46 = vpop.f32.mrb[9].mxu1 }
 0x4bc   :  { %v1713_v21 = vadd.f32 %v1712_v46, %v1513_v43  ;;  %v1714_v47 = vpop.f32.mrb[10].mxu1 }
 0x4bd   :  { %v1715_v48 = vpop.f32.mrb[11].mxu1 }
 0x4be   :  { %v1719_v49 = vcombine.low %v1711_v45, %v1713_v21 }
 0x4c0   :  { %2472 = vst.sshfl [vmem:[#allocation13] sm:$0x33 pattern:$0x76325410] %v1719_v49 }
 0x4c1   :  { %3095 = shalt.err (!%p3092_p10)
}
 0x4c2   :  { %s3096_s1 = scalar_lea.hbm %s3399_s9, 64 }
 0x4c3   :  { %p3097_p11 = scmp.ne.s32.totalorder %s3399_s9, %s3096_s1  ;;  %p3100_p12 = scmp.lt.u32.totalorder %s3096_s1, %s3399_s9 }
 0x4c5   :  { %p3102_p13 = pnand %p3100_p12, %p3097_p11 }
 0x4c7   :  { %3105 = shalt.err (!%p3102_p13)
}
 0x4c8   :  { %2250 = dma.vmem_to_hbm [thread:$0]  %s2248_s11, 64, %s3399_s9, [#allocation4]   ;;  %v2506_v50 = vld [vmem:[%s3398_s8 + $0x8] sm:$0x3] }
 0x4c9   :  { %v2021_v51 = vrot.slane %v2506_v50, %v3321_v61  ;;  %v2025_v52 = vrot.slane %v2506_v50, %v3323_v62  ;;  %s3154_s22 = smov [#allocation14]  }
 0x4ca   :  { %s2257_s23 = sshll.u32 %s3154_s22, 4  ;;  %s2258_s23 = int_to_ptr.vmem [resolvable:$true] %s2257_s23 }
 0x4cb   :  { %s3106_s9 = scalar_lea.vmem %s2258_s23, 64  ;;  %p3111_p1 = scmp.lt.s32.totalorder %s2258_s23, %s2258_s23 }
 0x4cc   :  { %p3107_p0 = scmp.ne.s32.totalorder %s2258_s23, %s3106_s9  ;;  %p3112_p2 = scmp.lt.s32.totalorder %s3106_s9, %s3106_s9 }
 0x4ce   :  { %p3113_p3 = por %p3112_p2, %p3111_p1 }
 0x4d0   :  { %p3114_p4 = pnand %p3113_p3, %p3107_p0 }
 0x4fa   :  { %v2222_v53 = vpop.f32.mrb[12].mxu1 }
 0x4fb   :  { %v2223_v54 = vadd.f32 %v2222_v53, %v2021_v51  ;;  %v2224_v55 = vpop.f32.mrb[13].mxu1 }
 0x4fc   :  { %v2225_v56 = vadd.f32 %v2224_v55, %v2025_v52  ;;  %v2226_v57 = vpop.f32.mrb[14].mxu1 }
 0x4fd   :  { %v2227_v58 = vpop.f32.mrb[15].mxu1 }
 0x4fe   :  { %v2231_v59 = vcombine.low %v2223_v54, %v2225_v56 }
 0x500   :  { %2539 = vst.sshfl [vmem:[#allocation14] sm:$0x33 pattern:$0x76325410] %v2231_v59 }
 0x501   :  { %3117 = shalt.err (!%p3114_p4)
}
 0x502   :  { %s3118_s25 = scalar_lea.hbm %s3400_s10, 64 }
 0x503   :  { %p3119_p5 = scmp.ne.s32.totalorder %s3400_s10, %s3118_s25  ;;  %p3122_p6 = scmp.lt.u32.totalorder %s3118_s25, %s3400_s10 }
 0x505   :  { %p3124_p7 = pnand %p3122_p6, %p3119_p5 }
 0x507   :  { %3127 = shalt.err (!%p3124_p7)
}
 0x508   :  { %2260 = dma.vmem_to_hbm [thread:$0]  %s2258_s23, 64, %s3400_s10, [#allocation15]  }
 0x509   :  { %3136 = dma.done.wait [#allocation4], 64  }
 0x50a   :  { %3137 = vsyncadd [#allocation4], 4294967232 }
 0x50b   :  { %3138 = dma.done.wait [#allocation15], 64  }
 0x50c   :  { %3139 = vsyncadd [#allocation15], 4294967232 }
 0x50d   :  { %2267 = vsyncpa [#allocation3], 1 }
 0x50e   :  { %2268 = vsyncpa [#allocation6], 1 }
 0x50f   :  { %2269 = vsyncpa [#allocation9], 1 }
 0x510   :  { %2270 = vsyncpa [#allocation12], 1 }
 0x511   :  { %2271 = vsyncpa [#allocation4], 1 }
 0x512   :  { %2272 = vsyncpa [#allocation15], 1 }

</bundles_post_ra>
